<compile_context>
chip_gen: v5e
topology: v5e:2x2
jax: 0.10.0
libtpu: 0.0.40
codegen_flags: <defaults>
</compile_context>

<pallas_src>
import functools

import numpy as np
import jax
import jax.numpy as jnp
from jax import lax
from jax.experimental import pallas as pl
from jax.experimental.pallas import tpu as pltpu


def _round_up(x, m):
    return (x + m - 1) // m * m


def _gdml_kernel(xs_ref, xst_ref, jxa_ref, xst_sq_ref, xst_jxa_ref,
                 es_ref, fsx_ref, xs_sq_sc, xs16_sc, *, q, std, c):
    t = pl.program_id(1)

    xs = xs_ref[...]              # (Mt, Dp)  f32 query descriptors (resident over t)
    xst = xst_ref[...]            # (Tt, Dp)  f32 training descriptors (streamed)
    jxa16 = jxa_ref[...]          # (Tt, Dp)  bf16 R_d_desc_alpha (streamed)
    xst_sq = xst_sq_ref[...]      # (1, Tt)   sum_d xst^2   (precomputed, f32)
    xst_jxa = xst_jxa_ref[...]    # (1, Tt)   sum_d xst*jxa (precomputed, f32)

    @pl.when(t == 0)
    def _():
        # t-invariant per-M-tile quantities + accumulator init (output blocks are
        # resident across the whole t axis since their index_map is (i, 0)).
        xs_sq_sc[...] = jnp.sum(xs * xs, axis=-1, keepdims=True)
        xs16_sc[...] = xs.astype(jnp.bfloat16)
        fsx_ref[...] = jnp.zeros_like(fsx_ref)
        es_ref[...] = jnp.zeros_like(es_ref)

    # ||xs - xst||^2 via the Gram trick.  Keep this matmul at full precision:
    # bf16 operands would wreck d2 via cancellation exactly where it matters.
    gram = lax.dot_general(xs, xst, (((1,), (1,)), ((), ())),
                           precision=lax.Precision.HIGHEST,
                           preferred_element_type=jnp.float32)          # (Mt, Tt)
    d2 = jnp.maximum(xs_sq_sc[...] + xst_sq - 2.0 * gram, 0.0)
    x_dists = q * jnp.sqrt(d2)                                          # (Mt, Tt)

    # dot_x_diff_Jx_alphas = q * (xs . jxa - sum_d xst*jxa); benign -> bf16 MXU.
    xs16 = xs16_sc[...]
    xs_jxa = lax.dot_general(xs16, jxa16, (((1,), (1,)), ((), ())),
                             preferred_element_type=jnp.float32)        # (Mt, Tt)
    dot = q * (xs_jxa - xst_jxa)

    e = jnp.exp(-x_dists)                # EUP; the q^2/3 factor is in the epilogue
    e1 = e * (1.0 + x_dists)
    w = e * dot                                                         # (Mt, Tt)
    sum_w = jnp.sum(w, axis=-1, keepdims=True)                          # (Mt, 1)

    # Fs_x (unscaled) += q*(xs*sum_w - w@xst) - e1@jxa ; both matmuls in bf16.
    xst16 = xst.astype(jnp.bfloat16)
    w_xst = lax.dot_general(w.astype(jnp.bfloat16), xst16,
                            (((1,), (0,)), ((), ())),
                            preferred_element_type=jnp.float32)         # (Mt, Dp)
    e1_jxa = lax.dot_general(e1.astype(jnp.bfloat16), jxa16,
                             (((1,), (0,)), ((), ())),
                             preferred_element_type=jnp.float32)        # (Mt, Dp)
    fsx_ref[...] += q * (xs * sum_w - w_xst) - e1_jxa

    # Es (unscaled) += sum_t(e1 * dot), broadcast across the 128-lane Es slab.
    es_ref[...] += jnp.sum(e1 * dot, axis=-1, keepdims=True)

    @pl.when(t == pl.num_programs(1) - 1)
    def _():
        fs_scale = (q * q / 3.0) * std        # restore q^2/3, fold std
        es_scale = (q / 3.0) * std            # (q^2/3) * (1/q) * std
        fsx_ref[...] = fsx_ref[...] * fs_scale
        es_ref[...] = es_ref[...] * es_scale + c


def gdml_forward(Rs, xs_train, Jx_alphas, agg_mat, tril_i, tril_j, *, sig, std, c):
    """JAX/Pallas port of GDMLTorchPredict.forward (Cartesian input, return_E=True)."""
    Rs = Rs.astype(jnp.float32)
    xs_train = xs_train.astype(jnp.float32)
    Jx_alphas = Jx_alphas.astype(jnp.float32)
    agg_mat = agg_mat.astype(jnp.float32)

    M, n_atoms, _ = Rs.shape
    T, D = xs_train.shape
    q = float(np.sqrt(5.0) / sig)

    # --- descriptor glue (tril gather / lane-sparse 3-vectors) in plain JAX ---
    diffs = Rs[:, :, None, :] - Rs[:, None, :, :]          # (M, N, N, 3)
    diffs = diffs[:, tril_i, tril_j, :]                    # (M, D, 3)
    xs = 1.0 / jnp.linalg.norm(diffs, axis=-1)             # (M, D)
    Jxs = diffs * (xs[:, :, None] ** 3)                    # (M, D, 3)
    # TODO(synk): lat_and_inv (minimum-image), alphas_E energy-constraint and
    #             train-index prediction branches not implemented.

    # --- tiling: 256-aligned for the 256x256 MXU on v6e/v7x (also fine on v5e) ---
    D_pad = max(_round_up(D, 256), 256)
    M_tile = min(256, _round_up(M, 16))
    M_pad = _round_up(M, M_tile)

    # --- VMEM budget (chip aware): v7x has 64 MiB/TC, v5e/v6e 128 MiB ---
    try:
        vmem_cap = int(pltpu.get_tpu_info().vmem_capacity_bytes)
    except Exception:                       # conservative (v7x-sized) fallback
        vmem_cap = 64 * 2 ** 20
    vmem_limit = int(min(3 * vmem_cap // 4, 112 * 2 ** 20))

    # resident per-M-tile bytes: xs in (2x f32) + Fs_x out (2x f32) + bf16 xs copy,
    # plus Es slabs / small scratch / slack.
    fixed_vmem = (2 * 4 + 2 * 4 + 2) * M_tile * D_pad
    fixed_vmem += 4 * M_tile * 128 * 4 + (2 << 20)
    # per training row: double-buffered xst(f32)+jxa(bf16) streams, the in-body
    # bf16 copy of xst and ~8-10 (Mt, Tt)-shaped f32/bf16 temporaries.
    per_t_row = 2 * (4 + 2) * D_pad + 2 * D_pad + 48 * M_tile
    t_tile = (vmem_limit - fixed_vmem) // per_t_row
    t_tile = max(256, t_tile // 256 * 256)
    t_tile = min(t_tile, 4096, _round_up(T, 256))
    T_pad = _round_up(T, t_tile)

    # --- padding to tiles; zero padding is exact for every sum in this kernel ---
    xs_p = jnp.zeros((M_pad, D_pad), jnp.float32).at[:M, :D].set(xs)
    xst_p = jnp.zeros((T_pad, D_pad), jnp.float32).at[:T, :D].set(xs_train)
    jxa_p = jnp.zeros((T_pad, D_pad), jnp.bfloat16).at[:T, :D].set(
        Jx_alphas.astype(jnp.bfloat16))
    # lane-dense per-training-row vectors, precomputed once; xst_jxa uses the
    # bf16-rounded jxa so it is consistent with the in-kernel xs@jxa.T term.
    xst_sq = jnp.sum(xst_p * xst_p, axis=-1)[None, :]                  # (1, T_pad)
    xst_jxa = jnp.sum(xst_p * jxa_p.astype(jnp.float32), axis=-1)[None, :]

    grid = (M_pad // M_tile, T_pad // t_tile)

    cost = pl.CostEstimate(
        flops=int(2 * M_pad * T_pad * D_pad * 6),      # f32 gram (multi-pass) + 3 bf16
        transcendentals=int(M_pad * T_pad),            # exp
        bytes_accessed=int(grid[0] * (T_pad * D_pad * (4 + 2) + 2 * T_pad * 4)
                           + 2 * M_pad * D_pad * 4 + M_pad * 128 * 4))

    kernel = functools.partial(_gdml_kernel, q=q, std=float(std), c=float(c))
    es_p, fsx_p = pl.pallas_call(
        kernel,
        grid=grid,
        in_specs=[
            pl.BlockSpec((M_tile, D_pad), lambda i, t: (i, 0)),   # xs        (f32)
            pl.BlockSpec((t_tile, D_pad), lambda i, t: (t, 0)),   # xs_train  (f32)
            pl.BlockSpec((t_tile, D_pad), lambda i, t: (t, 0)),   # Jx_alphas (bf16)
            pl.BlockSpec((1, t_tile), lambda i, t: (0, t)),       # sum_d xst^2
            pl.BlockSpec((1, t_tile), lambda i, t: (0, t)),       # sum_d xst*jxa
        ],
        out_specs=(
            pl.BlockSpec((M_tile, 128), lambda i, t: (i, 0)),     # Es (lane-dense)
            pl.BlockSpec((M_tile, D_pad), lambda i, t: (i, 0)),   # Fs_x
        ),
        out_shape=(jax.ShapeDtypeStruct((M_pad, 128), jnp.float32),
                   jax.ShapeDtypeStruct((M_pad, D_pad), jnp.float32)),
        scratch_shapes=[pltpu.VMEM((M_tile, 1), jnp.float32),        # sum_d xs^2
                        pltpu.VMEM((M_tile, D_pad), jnp.bfloat16)],  # bf16 xs copy
        compiler_params=pltpu.CompilerParams(
            # TODO(synk): on v7x, CORE_PARALLEL on the M axis (with >= 2 M tiles)
            #             would engage both TensorCores explicitly.
            dimension_semantics=("parallel", "arbitrary"),
            vmem_limit_bytes=vmem_limit),
        cost_estimate=cost,
    )(xs_p, xst_p, jxa_p, xst_sq, xst_jxa)

    Es = es_p[:M, 0]
    Fs_x = fsx_p[:M, :D]                        # already scaled by q^2*std/3
    # tiny +/-1 atom-pair scatter kept outside the kernel (std already folded in)
    Fs = jnp.einsum('ad,mdc,md->mac', agg_mat, Jxs, Fs_x)
    return Es, Fs


def _apply_perms(x, perm_idxs, n_perms, dim_d):
    # mirrors GDMLTorchPredict.apply_perms_to_obj
    tiled = np.tile(x, (1, n_perms))
    return tiled[:, perm_idxs].reshape(-1, dim_d)


def _reference(Rs, xs_train, Jx_alphas, agg, tril_i, tril_j, sig, std, c):
    # float64 NumPy reference of GDMLTorchPredict._forward (no lattice, no alphas_E)
    Rs = np.asarray(Rs, np.float64)
    xs_train = np.asarray(xs_train, np.float64)
    Jx_alphas = np.asarray(Jx_alphas, np.float64)
    agg = np.asarray(agg, np.float64)
    q = np.sqrt(5.0) / sig
    diffs = Rs[:, :, None, :] - Rs[:, None, :, :]
    diffs = diffs[:, tril_i, tril_j, :]
    xs = 1.0 / np.linalg.norm(diffs, axis=-1)
    Jxs = diffs * xs[:, :, None] ** 3
    x_diffs = q * (xs[:, None, :] - xs_train[None, :, :])
    x_dists = np.linalg.norm(x_diffs, axis=-1)
    exp_xs = np.exp(-x_dists) * q ** 2 / 3.0
    e1 = exp_xs * (1.0 + x_dists)
    dot = np.einsum('mtd,td->mt', x_diffs, Jx_alphas)
    Fs_x = np.einsum('mt,mt,mtd->md', exp_xs, dot, x_diffs)
    Fs_x -= e1 @ Jx_alphas
    Es = np.einsum('mt,mt->m', e1, dot) / q
    Fs = np.einsum('ad,mdc,md->mac', agg, Jxs, Fs_x) * std
    Es = Es * std + c
    return Es, Fs


if __name__ == "__main__":
    # Small synthetic model (shapes implied by GDMLTorchPredict.__init__).
    n_atoms = 8
    dim_d = n_atoms * (n_atoms - 1) // 2        # 28 atom pairs
    n_train = 16
    n_perms = 2
    M = 4                                       # batch of geometries
    sig, std, c = 10, 1.5, -100.0

    key = jax.random.PRNGKey(0)
    k1, k2, k3 = jax.random.split(key, 3)
    # model['R_desc'] : (dim_d, n_train) ;  _xs_train = R_desc.T
    R_desc = jax.random.uniform(k1, (dim_d, n_train), jnp.float32, 0.2, 1.0)
    # model['R_d_desc_alpha'] : (n_train, dim_d)
    R_d_desc_alpha = jax.random.normal(k2, (n_train, dim_d), jnp.float32)
    # query geometries (M, n_atoms, 3)
    Rs = jax.random.normal(k3, (M, n_atoms, 3), jnp.float32) * 2.0

    # permutation cache (identity permutation at index 0 + one synthetic extra perm)
    perm_idxs = np.stack([np.arange(dim_d),
                          dim_d + np.arange(dim_d)[::-1]]).astype(np.int64)
    xs_train = _apply_perms(np.asarray(R_desc).T, perm_idxs, n_perms, dim_d)
    Jx_alphas = _apply_perms(np.asarray(R_d_desc_alpha), perm_idxs, n_perms, dim_d)

    # agg_mat buffer: agg_mat[i, col] = -1 ; agg_mat[j, col] = +1
    tril_i, tril_j = np.tril_indices(n_atoms, k=-1)
    agg_mat = np.zeros((n_atoms, dim_d), np.float32)
    agg_mat[tril_i, np.arange(dim_d)] = -1.0
    agg_mat[tril_j, np.arange(dim_d)] = 1.0

    Es, Fs = gdml_forward(Rs,
                          jnp.asarray(xs_train, jnp.float32),
                          jnp.asarray(Jx_alphas, jnp.float32),
                          jnp.asarray(agg_mat),
                          tril_i, tril_j, sig=sig, std=std, c=c)
    Es, Fs = jax.block_until_ready((Es, Fs))

    Es_ref, Fs_ref = _reference(Rs, xs_train, Jx_alphas, agg_mat,
                                tril_i, tril_j, sig, std, c)
    # f32 Gram-trick distances + bf16 MXU contractions vs the f64 reference.
    np.testing.assert_allclose(np.asarray(Es), Es_ref, rtol=1e-2, atol=1e-2)
    np.testing.assert_allclose(np.asarray(Fs), Fs_ref, rtol=1e-2, atol=1e-2)
    print("KERNEL_OK")
</pallas_src>

<mosaic_0001>
module attributes {stable_mosaic.version = 11 : i64} {
  func.func @_gdml_kernel(%arg0: i32, %arg1: i32, %arg2: memref<16x256xf32, #tpu.memory_space<vmem>>, %arg3: memref<256x256xf32, #tpu.memory_space<vmem>>, %arg4: memref<256x256xbf16, #tpu.memory_space<vmem>>, %arg5: memref<1x256xf32, #tpu.memory_space<vmem>>, %arg6: memref<1x256xf32, #tpu.memory_space<vmem>>, %arg7: memref<16x128xf32, #tpu.memory_space<vmem>>, %arg8: memref<16x256xf32, #tpu.memory_space<vmem>>, %arg9: memref<16x1xf32, #tpu.memory_space<vmem>>, %arg10: memref<16x256xbf16, #tpu.memory_space<vmem>>) attributes {dimension_semantics = [#tpu.dimension_semantics<parallel>, #tpu.dimension_semantics<arbitrary>], iteration_bounds = array<i64: 1, 1>, scalar_prefetch = 0 : i64, scratch_operands = 2 : i64, tpu.core_type = #tpu.core_type<tc>, window_params = [{transform_indices = @transform_0, window_bounds = array<i64: 16, 256>}, {transform_indices = @transform_1, window_bounds = array<i64: 256, 256>}, {transform_indices = @transform_2, window_bounds = array<i64: 256, 256>}, {transform_indices = @transform_3, window_bounds = array<i64: 1, 256>}, {transform_indices = @transform_4, window_bounds = array<i64: 1, 256>}, {transform_indices = @transform_5, window_bounds = array<i64: 16, 128>}, {transform_indices = @transform_6, window_bounds = array<i64: 16, 256>}]} {
    %c0 = arith.constant 0 : index
    %c0_0 = arith.constant 0 : index
    %0 = vector.load %arg2[%c0, %c0_0] : memref<16x256xf32, #tpu.memory_space<vmem>>, vector<16x256xf32>
    %c0_1 = arith.constant 0 : index
    %c0_2 = arith.constant 0 : index
    %1 = vector.load %arg3[%c0_1, %c0_2] : memref<256x256xf32, #tpu.memory_space<vmem>>, vector<256x256xf32>
    %c0_3 = arith.constant 0 : index
    %c0_4 = arith.constant 0 : index
    %2 = vector.load %arg4[%c0_3, %c0_4] : memref<256x256xbf16, #tpu.memory_space<vmem>>, vector<256x256xbf16>
    %c0_5 = arith.constant 0 : index
    %c0_6 = arith.constant 0 : index
    %3 = vector.load %arg5[%c0_5, %c0_6] : memref<1x256xf32, #tpu.memory_space<vmem>>, vector<1x256xf32>
    %c0_7 = arith.constant 0 : index
    %c0_8 = arith.constant 0 : index
    %4 = vector.load %arg6[%c0_7, %c0_8] : memref<1x256xf32, #tpu.memory_space<vmem>>, vector<1x256xf32>
    %c0_i32 = arith.constant 0 : i32
    %5 = arith.cmpi eq, %arg1, %c0_i32 : i32
    %6 = arith.extui %5 : i1 to i32
    %c0_i32_9 = arith.constant 0 : i32
    %7 = arith.cmpi ne, %6, %c0_i32_9 : i32
    scf.if %7 {
      %60 = arith.mulf %0, %0 : vector<16x256xf32>
      %cst_36 = arith.constant dense<0.000000e+00> : vector<16xf32>
      %61 = vector.multi_reduction <add>, %60, %cst_36 [1] : vector<16x256xf32> to vector<16xf32>
      %62 = vector.shape_cast %61 : vector<16xf32> to vector<16x1xf32>
      %c0_37 = arith.constant 0 : index
      %c0_38 = arith.constant 0 : index
      %63 = vector.load %arg9[%c0_37, %c0_38] : memref<16x1xf32, #tpu.memory_space<vmem>>, vector<16x1xf32>
      tpu.vector_store %arg9[%c0_37, %c0_38], %62 {strides = array<i32>} : memref<16x1xf32, #tpu.memory_space<vmem>>, vector<16x1xf32>,
      %64 = arith.truncf %0 : vector<16x256xf32> to vector<16x256xbf16>
      %c0_39 = arith.constant 0 : index
      %c0_40 = arith.constant 0 : index
      %65 = vector.load %arg10[%c0_39, %c0_40] : memref<16x256xbf16, #tpu.memory_space<vmem>>, vector<16x256xbf16>
      tpu.vector_store %arg10[%c0_39, %c0_40], %64 {strides = array<i32>} : memref<16x256xbf16, #tpu.memory_space<vmem>>, vector<16x256xbf16>,
      %cst_41 = arith.constant 0.000000e+00 : f32
      %66 = vector.broadcast %cst_41 : f32 to vector<16x256xf32>
      %c0_42 = arith.constant 0 : index
      %c0_43 = arith.constant 0 : index
      %67 = vector.load %arg8[%c0_42, %c0_43] : memref<16x256xf32, #tpu.memory_space<vmem>>, vector<16x256xf32>
      tpu.vector_store %arg8[%c0_42, %c0_43], %66 {strides = array<i32>} : memref<16x256xf32, #tpu.memory_space<vmem>>, vector<16x256xf32>,
      %cst_44 = arith.constant 0.000000e+00 : f32
      %68 = vector.broadcast %cst_44 : f32 to vector<16x128xf32>
      %c0_45 = arith.constant 0 : index
      %c0_46 = arith.constant 0 : index
      %69 = vector.load %arg7[%c0_45, %c0_46] : memref<16x128xf32, #tpu.memory_space<vmem>>, vector<16x128xf32>
      tpu.vector_store %arg7[%c0_45, %c0_46], %68 {strides = array<i32>} : memref<16x128xf32, #tpu.memory_space<vmem>>, vector<16x128xf32>,
    } else {
    }
    %cst = arith.constant dense<0.000000e+00> : vector<16x256xf32>
    %8 = tpu.matmul %0, %1, %cst {dimension_numbers = #tpu.dot_dimension_numbers<[1], [1], [0], [0], [0, 0, 1, 0], [], []>, precision = #tpu.contract_precision<fp32>} : vector<16x256xf32>, vector<256x256xf32>, vector<16x256xf32> -> vector<16x256xf32>
    %c0_10 = arith.constant 0 : index
    %c0_11 = arith.constant 0 : index
    %9 = vector.load %arg9[%c0_10, %c0_11] : memref<16x1xf32, #tpu.memory_space<vmem>>, vector<16x1xf32>
    %10 = vector.broadcast %9 : vector<16x1xf32> to vector<16x256xf32>
    %11 = vector.broadcast %3 : vector<1x256xf32> to vector<16x256xf32>
    %12 = arith.addf %10, %11 : vector<16x256xf32>
    %cst_12 = arith.constant 2.000000e+00 : f32
    %13 = vector.broadcast %cst_12 : f32 to vector<16x256xf32>
    %14 = arith.mulf %13, %8 : vector<16x256xf32>
    %15 = arith.subf %12, %14 : vector<16x256xf32>
    %cst_13 = arith.constant 0.000000e+00 : f32
    %16 = vector.broadcast %cst_13 : f32 to vector<16x256xf32>
    %17 = arith.maximumf %15, %16 : vector<16x256xf32>
    %18 = math.sqrt %17 : vector<16x256xf32>
    %cst_14 = arith.constant 0.223606795 : f32
    %19 = vector.broadcast %cst_14 : f32 to vector<16x256xf32>
    %20 = arith.mulf %19, %18 : vector<16x256xf32>
    %c0_15 = arith.constant 0 : index
    %c0_16 = arith.constant 0 : index
    %21 = vector.load %arg10[%c0_15, %c0_16] : memref<16x256xbf16, #tpu.memory_space<vmem>>, vector<16x256xbf16>
    %cst_17 = arith.constant dense<0.000000e+00> : vector<16x256xf32>
    %22 = tpu.matmul %21, %2, %cst_17 {dimension_numbers = #tpu.dot_dimension_numbers<[1], [1], [0], [0], [0, 0, 1, 0], [], []>} : vector<16x256xbf16>, vector<256x256xbf16>, vector<16x256xf32> -> vector<16x256xf32>
    %23 = vector.broadcast %4 : vector<1x256xf32> to vector<16x256xf32>
    %24 = arith.subf %22, %23 : vector<16x256xf32>
    %cst_18 = arith.constant 0.223606795 : f32
    %25 = vector.broadcast %cst_18 : f32 to vector<16x256xf32>
    %26 = arith.mulf %25, %24 : vector<16x256xf32>
    %cst_19 = arith.constant 0.000000e+00 : f32
    %27 = vector.broadcast %cst_19 : f32 to vector<16x256xf32>
    %28 = arith.subf %27, %20 : vector<16x256xf32>
    %29 = math.exp %28 : vector<16x256xf32>
    %cst_20 = arith.constant 1.000000e+00 : f32
    %30 = vector.broadcast %cst_20 : f32 to vector<16x256xf32>
    %31 = arith.addf %30, %20 : vector<16x256xf32>
    %32 = arith.mulf %29, %31 : vector<16x256xf32>
    %33 = arith.mulf %29, %26 : vector<16x256xf32>
    %cst_21 = arith.constant dense<0.000000e+00> : vector<16xf32>
    %34 = vector.multi_reduction <add>, %33, %cst_21 [1] : vector<16x256xf32> to vector<16xf32>
    %35 = vector.shape_cast %34 : vector<16xf32> to vector<16x1xf32>
    %36 = arith.truncf %1 : vector<256x256xf32> to vector<256x256xbf16>
    %37 = arith.truncf %33 : vector<16x256xf32> to vector<16x256xbf16>
    %cst_22 = arith.constant dense<0.000000e+00> : vector<16x256xf32>
    %38 = tpu.matmul %37, %36, %cst_22 {dimension_numbers = #tpu.dot_dimension_numbers<[1], [0], [0], [1], [0, 0, 1, 1], [], []>} : vector<16x256xbf16>, vector<256x256xbf16>, vector<16x256xf32> -> vector<16x256xf32>
    %39 = arith.truncf %32 : vector<16x256xf32> to vector<16x256xbf16>
    %cst_23 = arith.constant dense<0.000000e+00> : vector<16x256xf32>
    %40 = tpu.matmul %39, %2, %cst_23 {dimension_numbers = #tpu.dot_dimension_numbers<[1], [0], [0], [1], [0, 0, 1, 1], [], []>} : vector<16x256xbf16>, vector<256x256xbf16>, vector<16x256xf32> -> vector<16x256xf32>
    %c0_24 = arith.constant 0 : index
    %c0_25 = arith.constant 0 : index
    %41 = vector.load %arg8[%c0_24, %c0_25] : memref<16x256xf32, #tpu.memory_space<vmem>>, vector<16x256xf32>
    %42 = vector.broadcast %35 : vector<16x1xf32> to vector<16x256xf32>
    %43 = arith.mulf %0, %42 : vector<16x256xf32>
    %44 = arith.subf %43, %38 : vector<16x256xf32>
    %cst_26 = arith.constant 0.223606795 : f32
    %45 = vector.broadcast %cst_26 : f32 to vector<16x256xf32>
    %46 = arith.mulf %45, %44 : vector<16x256xf32>
    %47 = arith.subf %46, %40 : vector<16x256xf32>
    %48 = arith.addf %41, %47 : vector<16x256xf32>
    %c0_27 = arith.constant 0 : index
    %c0_28 = arith.constant 0 : index
    %49 = vector.load %arg8[%c0_27, %c0_28] : memref<16x256xf32, #tpu.memory_space<vmem>>, vector<16x256xf32>
    tpu.vector_store %arg8[%c0_27, %c0_28], %48 {strides = array<i32>} : memref<16x256xf32, #tpu.memory_space<vmem>>, vector<16x256xf32>,
    %c0_29 = arith.constant 0 : index
    %c0_30 = arith.constant 0 : index
    %50 = vector.load %arg7[%c0_29, %c0_30] : memref<16x128xf32, #tpu.memory_space<vmem>>, vector<16x128xf32>
    %51 = arith.mulf %32, %26 : vector<16x256xf32>
    %cst_31 = arith.constant dense<0.000000e+00> : vector<16xf32>
    %52 = vector.multi_reduction <add>, %51, %cst_31 [1] : vector<16x256xf32> to vector<16xf32>
    %53 = vector.shape_cast %52 : vector<16xf32> to vector<16x1xf32>
    %54 = vector.broadcast %53 : vector<16x1xf32> to vector<16x128xf32>
    %55 = arith.addf %50, %54 : vector<16x128xf32>
    %c0_32 = arith.constant 0 : index
    %c0_33 = arith.constant 0 : index
    %56 = vector.load %arg7[%c0_32, %c0_33] : memref<16x128xf32, #tpu.memory_space<vmem>>, vector<16x128xf32>
    tpu.vector_store %arg7[%c0_32, %c0_33], %55 {strides = array<i32>} : memref<16x128xf32, #tpu.memory_space<vmem>>, vector<16x128xf32>,
    %c0_i32_34 = arith.constant 0 : i32
    %57 = arith.cmpi eq, %arg1, %c0_i32_34 : i32
    %58 = arith.extui %57 : i1 to i32
    %c0_i32_35 = arith.constant 0 : i32
    %59 = arith.cmpi ne, %58, %c0_i32_35 : i32
    scf.if %59 {
      %c0_36 = arith.constant 0 : index
      %c0_37 = arith.constant 0 : index
      %60 = vector.load %arg8[%c0_36, %c0_37] : memref<16x256xf32, #tpu.memory_space<vmem>>, vector<16x256xf32>
      %cst_38 = arith.constant 2.500000e-02 : f32
      %61 = vector.broadcast %cst_38 : f32 to vector<16x256xf32>
      %62 = arith.mulf %60, %61 : vector<16x256xf32>
      %c0_39 = arith.constant 0 : index
      %c0_40 = arith.constant 0 : index
      %63 = vector.load %arg8[%c0_39, %c0_40] : memref<16x256xf32, #tpu.memory_space<vmem>>, vector<16x256xf32>
      tpu.vector_store %arg8[%c0_39, %c0_40], %62 {strides = array<i32>} : memref<16x256xf32, #tpu.memory_space<vmem>>, vector<16x256xf32>,
      %c0_41 = arith.constant 0 : index
      %c0_42 = arith.constant 0 : index
      %64 = vector.load %arg7[%c0_41, %c0_42] : memref<16x128xf32, #tpu.memory_space<vmem>>, vector<16x128xf32>
      %cst_43 = arith.constant 0.111803398 : f32
      %65 = vector.broadcast %cst_43 : f32 to vector<16x128xf32>
      %66 = arith.mulf %64, %65 : vector<16x128xf32>
      %cst_44 = arith.constant -1.000000e+02 : f32
      %67 = vector.broadcast %cst_44 : f32 to vector<16x128xf32>
      %68 = arith.addf %66, %67 : vector<16x128xf32>
      %c0_45 = arith.constant 0 : index
      %c0_46 = arith.constant 0 : index
      %69 = vector.load %arg7[%c0_45, %c0_46] : memref<16x128xf32, #tpu.memory_space<vmem>>, vector<16x128xf32>
      tpu.vector_store %arg7[%c0_45, %c0_46], %68 {strides = array<i32>} : memref<16x128xf32, #tpu.memory_space<vmem>>, vector<16x128xf32>,
    } else {
    }
    return
  }
  func.func @transform_0(%arg0: i32, %arg1: i32) -> (i32, i32) {
    %c0_i32 = arith.constant 0 : i32
    %c0_i32_0 = arith.constant 0 : i32
    return %arg0, %c0_i32 : i32, i32
  }
  func.func @transform_1(%arg0: i32, %arg1: i32) -> (i32, i32) {
    %c0_i32 = arith.constant 0 : i32
    %c0_i32_0 = arith.constant 0 : i32
    return %arg1, %c0_i32 : i32, i32
  }
  func.func @transform_2(%arg0: i32, %arg1: i32) -> (i32, i32) {
    %c0_i32 = arith.constant 0 : i32
    %c0_i32_0 = arith.constant 0 : i32
    return %arg1, %c0_i32 : i32, i32
  }
  func.func @transform_3(%arg0: i32, %arg1: i32) -> (i32, i32) {
    %c0_i32 = arith.constant 0 : i32
    %c0_i32_0 = arith.constant 0 : i32
    return %c0_i32, %arg1 : i32, i32
  }
  func.func @transform_4(%arg0: i32, %arg1: i32) -> (i32, i32) {
    %c0_i32 = arith.constant 0 : i32
    %c0_i32_0 = arith.constant 0 : i32
    return %c0_i32, %arg1 : i32, i32
  }
  func.func @transform_5(%arg0: i32, %arg1: i32) -> (i32, i32) {
    %c0_i32 = arith.constant 0 : i32
    %c0_i32_0 = arith.constant 0 : i32
    return %arg0, %c0_i32 : i32, i32
  }
  func.func @transform_6(%arg0: i32, %arg1: i32) -> (i32, i32) {
    %c0_i32 = arith.constant 0 : i32
    %c0_i32_0 = arith.constant 0 : i32
    return %arg0, %c0_i32 : i32, i32
  }
}

</mosaic_0001>

<bundles_post_ra>
// kernel: tpu_custom_call.1
= control target key start
LH: loop header
LB: loop body
LE: loop exit
PB: predicated region body
PF: predicated region fallthrough
CT: control target
= control target key end

     0   :  { %12 = vsyncpa [#allocation5], 0  ;;  %s4126_s0 = inlined_call_operand.hbm [shape: f32[16,256], index: 0, kind: input, shape index: {}]   ;;  %s4127_s1 = inlined_call_operand.hbm [shape: f32[256,256], index: 1, kind: input, shape index: {}]   ;;  %s4128_s2 = inlined_call_operand.hbm [shape: bf16[256,256], index: 2, kind: input, shape index: {}]   ;;  %s4129_s3 = inlined_call_operand.vmem [shape: f32[1,256], index: 3, kind: input, shape index: {}]   ;;  %s4130_s4 = inlined_call_operand.hbm [shape: f32[1,256], index: 4, kind: input, shape index: {}]   ;;  %s4131_s5 = inlined_call_operand.hbm [shape: f32[16,128], index: 5, kind: output, shape index: {0}]   ;;  %s4132_s6 = inlined_call_operand.hbm [shape: f32[16,256], index: 6, kind: output, shape index: {1}]  }
   0x1   :  { %13 = vsyncpa [#allocation8], 0 }
   0x2   :  { %14 = vsyncpa [#allocation11], 0 }
   0x3   :  { %15 = vsyncpa [#allocation6], 0 }
   0x4   :  { %16 = vsyncpa [#allocation14], 0  ;;  %s34_s23 = sshll.u32 %s4127_s1, 4  ;;  %s2725_s24 = smov [#allocation7]   ;;  %s35_s23 = int_to_ptr.hbm [resolvable:$true] %s34_s23 }
   0x5   :  { %s36_s25 = sshll.u32 %s2725_s24, 4  ;;  %s21_s28 = sshll.u32 %s4126_s0, 4  ;;  %s37_s25 = int_to_ptr.vmem [resolvable:$true] %s36_s25  ;;  %s22_s28 = int_to_ptr.hbm [resolvable:$true] %s21_s28 }
   0x6   :  { %s2726_s29 = smov 256   ;;  %s2727_s30 = smov 16  }
   0x7   :  { %42 = dma.hbm_to_vmem [thread:$0]  %s35_s23, 8192, %s37_s25, [#allocation8], %s2726_s29, %s2726_s29, %s2727_s30  }
   0x8   :  { %s2728_s7 = smov [#allocation4]   ;;  %s47_s1 = sshll.u32 %s4128_s2, 4  ;;  %s48_s1 = int_to_ptr.hbm [resolvable:$true] %s47_s1 }
   0x9   :  { %s23_s8 = sshll.u32 %s2728_s7, 4  ;;  %s2729_s0 = smov [#allocation9]   ;;  %s24_s8 = int_to_ptr.vmem [resolvable:$true] %s23_s8 }
   0xa   :  { %29 = dma.hbm_to_vmem [thread:$0]  %s22_s28, 512, %s24_s8, [#allocation5], %s2726_s29, %s2726_s29, %s2727_s30  }
   0xb   :  { %s49_s11 = sshll.u32 %s2729_s0, 4  ;;  %s63_s14 = sshll.u32 %s4130_s4, 4  ;;  %s50_s11 = int_to_ptr.vmem [resolvable:$true] %s49_s11  ;;  %s64_s14 = int_to_ptr.hbm [resolvable:$true] %s63_s14 }
   0xc   :  { %s2730_s15 = smov 128   ;;  %s2731_s16 = smov 8  }
   0xd   :  { %55 = dma.hbm_to_vmem [thread:$0]  %s48_s1, 4096, %s50_s11, [#allocation8], %s2730_s15, %s2730_s15, %s2731_s16  }
   0xe   :  { %s2732_s2 = smov [#allocation10]  }
   0xf   :  { %s65_s17 = sshll.u32 %s2732_s2, 4  ;;  %s66_s17 = int_to_ptr.vmem [resolvable:$true] %s65_s17 }
  0x10   :  { %68 = dma.hbm_to_vmem [thread:$0]  %s64_s14, 32, %s66_s17, [#allocation11]  }
  0x11   :  { %2715 = dma.done.wait [#allocation5], 512  }
  0x12   :  { %2716 = vsyncadd [#allocation5], 4294966784 }
  0x13   :  { %2717 = dma.done.wait [#allocation8], 12288  }
  0x14   :  { %2718 = vsyncadd [#allocation8], 4294955008 }
  0x15   :  { %2719 = dma.done.wait [#allocation11], 32  }
  0x16   :  { %2720 = vsyncadd [#allocation11], 4294967264  ;;  %v119_v0 = vld [vmem:[#allocation7 + $0xf0] sm:$0xff]  ;;  %v117_v1 = vld [vmem:[#allocation7 + $0xe0] sm:$0xff]  ;;  %vm201_vm0 = vcmask 7168   ;;  %s2279_s22 = sshll.u32 %s4131_s5, 4  ;;  %s2280_s22 = int_to_ptr.hbm [resolvable:$true] %s2279_s22 }
  0x17   :  { %v115_v2 = vld [vmem:[#allocation7 + $0xd0] sm:$0xff]  ;;  %v2792_v3 = vand.u32 4294901760, %v119_v0  ;;  %v2794_v4 = vand.u32 4294901760, %v117_v1  ;;  %v113_v6 = vld [vmem:[#allocation7 + $0xc0] sm:$0xff]  ;;  %s2735_s5 = smov [#allocation13]   ;;  %s2292_s26 = sshll.u32 %s4132_s6, 4  ;;  %s2293_s26 = int_to_ptr.hbm [resolvable:$true] %s2292_s26 }
  0x18   :  { %v2796_v5 = vand.u32 4294901760, %v115_v2  ;;  %v2809_v10 = vand.u32 4294901760, %v113_v6  ;;  %v111_v11 = vld [vmem:[#allocation7 + $0xb0] sm:$0xff]  ;;  %v109_v19 = vld [vmem:[#allocation7 + $0xa0] sm:$0xff]  ;;  %s2290_s23 = sshll.u32 %s2735_s5, 4  ;;  %s2291_s23 = int_to_ptr.vmem [resolvable:$true] %s2290_s23 }
  0x19   :  { %215 = vmatpush.xpose.msra.mxu0 %v2792_v3  ;;  %428 = vmatpush.xpose.msra.mxu3 %v2792_v3  ;;  %v2801_v7 = vsub.f32 %v119_v0, %v2792_v3  ;;  %v2804_v8 = vsub.f32 %v117_v1, %v2794_v4  ;;  %v2814_v14 = vand.u32 4294901760, %v111_v11  ;;  %v2829_v21 = vand.u32 4294901760, %v109_v19  ;;  %v107_v26 = vld [vmem:[#allocation7 + $0x90] sm:$0xff]  ;;  %v105_v32 = vld [vmem:[#allocation7 + $0x80] sm:$0xff] }
  0x1a   :  { %v2807_v9 = vsub.f32 %v115_v2, %v2796_v5  ;;  %v2825_v17 = vsub.f32 %v113_v6, %v2809_v10  ;;  %v2841_v27 = vand.u32 4294901760, %v107_v26  ;;  %v2853_v33 = vand.u32 4294901760, %v105_v32  ;;  %v103_v38 = vld [vmem:[#allocation7 + $0x70] sm:$0xff]  ;;  %v101_v44 = vld [vmem:[#allocation7 + $0x60] sm:$0xff] }
  0x1b   :  { %370 = vmatpush.xpose.msra.mxu2 %v2801_v7  ;;  %v265_v12 = vand.u32 4294901760, %v2801_v7  ;;  %v271_v13 = vand.u32 4294901760, %v2804_v8  ;;  %v2836_v24 = vsub.f32 %v111_v11, %v2814_v14  ;;  %v2848_v30 = vsub.f32 %v109_v19, %v2829_v21  ;;  %v99_v50 = vld [vmem:[#allocation7 + $0x50] sm:$0xff]  ;;  %v97_v56 = vld [vmem:[#allocation7 + $0x40] sm:$0xff] }
  0x1c   :  { %v277_v18 = vand.u32 4294901760, %v2807_v9  ;;  %v4147_v25 = vand.u32 4294901760, %v2825_v17  ;;  %v2860_v36 = vsub.f32 %v107_v26, %v2841_v27  ;;  %v2865_v39 = vand.u32 4294901760, %v103_v38  ;;  %v95_v62 = vld [vmem:[#allocation7 + $0x30] sm:$0xff]  ;;  %v93_v11 = vld [vmem:[#allocation7 + $0x20] sm:$0xff] }
  0x1d   :  { %217 = vmatpush.xpose.msra.mxu0 %v2794_v4  ;;  %430 = vmatpush.xpose.msra.mxu3 %v2794_v4  ;;  %v266_v15 = vsub.f32 %v2801_v7, %v265_v12  ;;  %v272_v16 = vsub.f32 %v2804_v8, %v271_v13  ;;  %v4145_v31 = vand.u32 4294901760, %v2836_v24  ;;  %v4144_v37 = vand.u32 4294901760, %v2848_v30  ;;  %v91_v26 = vld [vmem:[#allocation7 + $0x10] sm:$0xff] }
  0x1e   :  { %v278_v23 = vsub.f32 %v2807_v9, %v277_v18  ;;  %v284_v29 = vsub.f32 %v2825_v17, %v4147_v25  ;;  %v2872_v42 = vsub.f32 %v105_v32, %v2853_v33  ;;  %v4143_v43 = vand.u32 4294901760, %v2860_v36  ;;  %v108_v25 = vld [vmem:[#allocation7 + $0x98] sm:$0xff] }
  0x1f   :  { %373 = vmatpush.xpose.msra.mxu2 %v2804_v8  ;;  %v267_v20 = vand.u32 4294901760, %v266_v15  ;;  %v273_v22 = vand.u32 4294901760, %v272_v16  ;;  %v290_v35 = vsub.f32 %v2836_v24, %v4145_v31  ;;  %v296_v41 = vsub.f32 %v2848_v30, %v4144_v37  ;;  %v120_v16 = vld [vmem:[#allocation7 + $0xf8] sm:$0xff] }
  0x20   :  { %v279_v28 = vand.u32 4294901760, %v278_v23  ;;  %v285_v34 = vand.u32 4294901760, %v284_v29  ;;  %v2878_v45 = vsub.f32 %v103_v38, %v2865_v39  ;;  %v302_v47 = vsub.f32 %v2860_v36, %v4143_v43  ;;  %v118_v29 = vld [vmem:[#allocation7 + $0xe8] sm:$0xff] }
  0x21   :  { %219 = vmatpush.xpose.msra.mxu0 %v2796_v5  ;;  %268 = vmatpush.xpose.msra.mxu1 %v267_v20  ;;  %v291_v40 = vand.u32 4294901760, %v290_v35  ;;  %v297_v46 = vand.u32 4294901760, %v296_v41  ;;  %v2884_v48 = vand.u32 4294901760, %v101_v44  ;;  %v4141_v49 = vand.u32 4294901760, %v2872_v42  ;;  %v89_v41 = vld [vmem:[#allocation7] sm:$0xff] }
  0x22   :  { %432 = vmatpush.xpose.msra.mxu3 %v2796_v5  ;;  %v2889_v51 = vand.u32 4294901760, %v99_v50  ;;  %v303_v52 = vand.u32 4294901760, %v302_v47  ;;  %v4140_v55 = vand.u32 4294901760, %v2878_v45  ;;  %v2901_v57 = vand.u32 4294901760, %v97_v56  ;;  %v116_v47 = vld [vmem:[#allocation7 + $0xd8] sm:$0xff] }
  0x23   :  { %376 = vmatpush.xpose.msra.mxu2 %v2807_v9  ;;  %v308_v53 = vsub.f32 %v2872_v42, %v4141_v49  ;;  %v2896_v54 = vsub.f32 %v101_v44, %v2884_v48  ;;  %v2920_v2 = vand.u32 4294901760, %v95_v62  ;;  %v2933_v23 = vand.u32 4294901760, %v93_v11  ;;  %v104_v9 = vld [vmem:[#allocation7 + $0x78] sm:$0xff] }
  0x24   :  { %v314_v59 = vsub.f32 %v2878_v45, %v4140_v55  ;;  %v2908_v60 = vsub.f32 %v99_v50, %v2889_v51  ;;  %v2914_v63 = vsub.f32 %v97_v56, %v2901_v57  ;;  %v2946_v38 = vand.u32 4294901760, %v91_v26  ;;  %v3021_v55 = vld [vmem:[#allocation4 + $0x18] sm:$0xff] }
  0x25   :  { %221 = vmatpush.xpose.msra.mxu0 %v2809_v10  ;;  %274 = vmatpush.xpose.msra.mxu1 %v273_v22  ;;  %v309_v58 = vand.u32 4294901760, %v308_v53  ;;  %v4137_v61 = vand.u32 4294901760, %v2896_v54  ;;  %v2931_v22 = vsub.f32 %v95_v62, %v2920_v2  ;;  %v2944_v35 = vsub.f32 %v93_v11, %v2933_v23  ;;  %v2976_v11 = vld [vmem:[#allocation4 + $0x8] sm:$0xff] }
  0x26   :  { %434 = vmatpush.xpose.msra.mxu3 %v2809_v10  ;;  %v315_v0 = vand.u32 4294901760, %v314_v59  ;;  %v4135_v6 = vand.u32 4294901760, %v2908_v60  ;;  %v4134_v15 = vand.u32 4294901760, %v2914_v63  ;;  %v2950_v44 = vand.u32 4294901760, %v118_v29 }
  0x27   :  { %379 = vmatpush.xpose.msra.mxu2 %v2825_v17  ;;  %v320_v1 = vsub.f32 %v2896_v54, %v4137_v61  ;;  %v2961_v53 = vsub.f32 %v91_v26, %v2946_v38  ;;  %v2963_v56 = vand.u32 4294901760, %v89_v41  ;;  %v2970_v62 = vand.u32 4294901760, %v116_v47 }
  0x28   :  { %v326_v20 = vsub.f32 %v2908_v60, %v4135_v6  ;;  %v332_v32 = vsub.f32 %v2914_v63, %v4134_v15  ;;  %v2968_v59 = vsub.f32 %v118_v29, %v2950_v44 }
  0x29   :  { %223 = vmatpush.xpose.msra.mxu0 %v2814_v14  ;;  %280 = vmatpush.xpose.msra.mxu1 %v279_v28  ;;  %v321_v19 = vand.u32 4294901760, %v320_v1  ;;  %v2937_v28 = vand.u32 4294901760, %v120_v16  ;;  %v2974_v1 = vld [vmem:[#allocation4] sm:$0xff]  ;;  %v2993_v15 = vsub.f32 %v116_v47, %v2970_v62 }
  0x2a   :  { %436 = vmatpush.xpose.msra.mxu3 %v2814_v14  ;;  %v333_v50 = vand.u32 4294901760, %v332_v32  ;;  %v2987_v32 = vsub.f32 %v89_v41, %v2963_v56  ;;  %v204_v41 = vpack.c.bf16 %v2976_v11, %v2974_v1 }
  0x2b   :  { %382 = vmatpush.xpose.msra.mxu2 %v2836_v24 }
  0x2c   :  { %206 = vst [vmem:[#allocation3] sm:$0xff] %v204_v41  ;;  %v110_v41 = vld [vmem:[#allocation7 + $0xa8] sm:$0xff] }
  0x2d   :  { %225 = vmatpush.xpose.msra.mxu0 %v2829_v21  ;;  %286 = vmatpush.xpose.msra.mxu1 %v285_v34  ;;  %v327_v34 = vand.u32 4294901760, %v326_v20  ;;  %v192_v20 = vmul.f32 %v2976_v11, %v2976_v11 }
  0x2e   :  { %438 = vmatpush.xpose.msra.mxu3 %v2829_v21 }
  0x2f   :  { %385 = vmatpush.xpose.msra.mxu2 %v2848_v30 }
  0x31   :  { %227 = vmatpush.xpose.msra.mxu0 %v2841_v27  ;;  %292 = vmatpush.xpose.msra.mxu1 %v291_v40  ;;  %v4133_v40 = vand.u32 4294901760, %v2931_v22 }
  0x32   :  { %440 = vmatpush.xpose.msra.mxu3 %v2841_v27 }
  0x33   :  { %388 = vmatpush.xpose.msra.mxu2 %v2860_v36 }
  0x35   :  { %229 = vmatpush.xpose.msra.mxu0 %v2853_v33  ;;  %298 = vmatpush.xpose.msra.mxu1 %v297_v46  ;;  %v2954_v46 = vsub.f32 %v120_v16, %v2937_v28  ;;  %v114_v16 = vld [vmem:[#allocation7 + $0xc8] sm:$0xff] }
  0x36   :  { %442 = vmatpush.xpose.msra.mxu3 %v2853_v33 }
  0x37   :  { %391 = vmatpush.xpose.msra.mxu2 %v2872_v42 }
  0x39   :  { %231 = vmatpush.xpose.msra.mxu0 %v2865_v39  ;;  %304 = vmatpush.xpose.msra.mxu1 %v303_v52  ;;  %v338_v52 = vsub.f32 %v2931_v22, %v4133_v40  ;;  %v4142_v40 = vand.u32 4294901760, %v2968_v59 }
  0x3a   :  { %444 = vmatpush.xpose.msra.mxu3 %v2865_v39 }
  0x3b   :  { %394 = vmatpush.xpose.msra.mxu2 %v2878_v45  ;;  %v339_v26 = vand.u32 4294901760, %v338_v52  ;;  %v2999_v52 = vand.u32 4294901760, %v114_v16 }
  0x3d   :  { %233 = vmatpush.xpose.msra.mxu0 %v2884_v48  ;;  %310 = vmatpush.xpose.msra.mxu1 %v309_v58  ;;  %v4136_v58 = vand.u32 4294901760, %v2944_v35 }
  0x3e   :  { %446 = vmatpush.xpose.msra.mxu3 %v2884_v48 }
  0x3f   :  { %397 = vmatpush.xpose.msra.mxu2 %v2896_v54  ;;  %v344_v29 = vsub.f32 %v2944_v35, %v4136_v58  ;;  %v112_v58 = vld [vmem:[#allocation7 + $0xb8] sm:$0xff] }
  0x41   :  { %235 = vmatpush.xpose.msra.mxu0 %v2889_v51  ;;  %316 = vmatpush.xpose.msra.mxu1 %v315_v0  ;;  %v4138_v0 = vand.u32 4294901760, %v2954_v46  ;;  %v345_v61 = vand.u32 4294901760, %v344_v29  ;;  %v3017_v29 = vand.u32 4294901760, %v112_v58 }
  0x42   :  { %448 = vmatpush.xpose.msra.mxu3 %v2889_v51 }
  0x43   :  { %400 = vmatpush.xpose.msra.mxu2 %v2908_v60 }
  0x45   :  { %237 = vmatpush.xpose.msra.mxu0 %v2901_v57  ;;  %322 = vmatpush.xpose.msra.mxu1 %v321_v19  ;;  %v191_v19 = vmul.f32 %v2974_v1, %v2974_v1 }
  0x46   :  { %450 = vmatpush.xpose.msra.mxu3 %v2901_v57 }
  0x47   :  { %403 = vmatpush.xpose.msra.mxu2 %v2914_v63  ;;  %v195_v6 = vadd.f32 %v192_v20, %v191_v19  ;;  %v4146_v19 = vand.u32 4294901760, %v2987_v32  ;;  %v644_v20 = vsub.f32 %v2968_v59, %v4142_v40  ;;  %v194_v40 = vmul.f32 %v3021_v55, %v3021_v55 }
  0x49   :  { %239 = vmatpush.xpose.msra.mxu0 %v2920_v2  ;;  %328 = vmatpush.xpose.msra.mxu1 %v327_v34  ;;  %v4139_v34 = vand.u32 4294901760, %v2961_v53  ;;  %v645_v43 = vand.u32 4294901760, %v644_v20 }
  0x4a   :  { %452 = vmatpush.xpose.msra.mxu3 %v2920_v2  ;;  %196 = vadd.xlane.f32.xlu0 %v195_v6 }
  0x4b   :  { %406 = vmatpush.xpose.msra.mxu2 %v2931_v22  ;;  %v350_v47 = vsub.f32 %v2961_v53, %v4139_v34  ;;  %v3019_v34 = vld [vmem:[#allocation4 + $0x10] sm:$0xff] }
  0x4c   :  { %v193_v49 = vmul.f32 %v3019_v34, %v3019_v34  ;;  %v205_v7 = vpack.c.bf16 %v3021_v55, %v3019_v34 }
  0x4d   :  { %241 = vmatpush.xpose.msra.mxu0 %v2933_v23  ;;  %334 = vmatpush.xpose.msra.mxu1 %v333_v50  ;;  %v638_v50 = vsub.f32 %v2954_v46, %v4138_v0  ;;  %v4154_v0 = vand.u32 4294901760, %v2993_v15 }
  0x4e   :  { %454 = vmatpush.xpose.msra.mxu3 %v2933_v23  ;;  %v198_v31 = vadd.f32 %v194_v40, %v193_v49  ;;  %207 = vst [vmem:[#allocation3 + $0x8] sm:$0xff] %v205_v7  ;;  %v3049_v49 = vand.u32 4294901760, %v108_v25 }
  0x4f   :  { %409 = vmatpush.xpose.msra.mxu2 %v2944_v35  ;;  %v639_v6 = vand.u32 4294901760, %v638_v50  ;;  %v351_v50 = vand.u32 4294901760, %v350_v47  ;;  %v650_v37 = vsub.f32 %v2993_v15, %v4154_v0  ;;  %v3040_v47 = vsub.f32 %v112_v58, %v3017_v29 }
  0x50   :  { %v3063_v8 = vsub.f32 %v108_v25, %v3049_v49 }
  0x51   :  { %243 = vmatpush.xpose.msra.mxu0 %v2946_v38  ;;  %340 = vmatpush.xpose.msra.mxu1 %v339_v26  ;;  %v3015_v26 = vsub.f32 %v114_v16, %v2999_v52  ;;  %v356_v16 = vsub.f32 %v2987_v32, %v4146_v19  ;;  %v3042_v19 = vand.u32 4294901760, %v110_v41  ;;  %v651_v40 = vand.u32 4294901760, %v650_v37 }
  0x52   :  { %456 = vmatpush.xpose.msra.mxu3 %v2946_v38  ;;  %199 = vadd.xlane.f32.xlu0 %v198_v31  ;;  %v4150_v20 = vand.u32 4294901760, %v3040_v47  ;;  %v106_v31 = vld [vmem:[#allocation7 + $0x88] sm:$0xff] }
  0x53   :  { %412 = vmatpush.xpose.msra.mxu2 %v2961_v53 }
  0x55   :  { %245 = vmatpush.xpose.msra.mxu0 %v2963_v56  ;;  %346 = vmatpush.xpose.msra.mxu1 %v345_v61  ;;  %v4152_v61 = vand.u32 4294901760, %v3015_v26 }
  0x56   :  { %458 = vmatpush.xpose.msra.mxu3 %v2963_v56 }
  0x57   :  { %415 = vmatpush.xpose.msra.mxu2 %v2987_v32  ;;  %v656_v58 = vsub.f32 %v3015_v26, %v4152_v61 }
  0x59   :  { %475 = vmatpush.xpose.msrb.mxu0 %v265_v12  ;;  %352 = vmatpush.xpose.msra.mxu1 %v351_v50  ;;  %v357_v12 = vand.u32 4294901760, %v356_v16  ;;  %v657_v37 = vand.u32 4294901760, %v656_v58  ;;  %v3072_v50 = vand.u32 4294901760, %v106_v31  ;;  %v3096_v58 = vand.u32 4294901760, %v3019_v34 }
  0x5a   :  { %640 = vmatpush.xpose.msrb.mxu3 %v639_v6  ;;  %v3056_v6 = vsub.f32 %v110_v41, %v3042_v19 }
  0x5b   :  { %587 = vmatpush.xpose.msrb.mxu2 %v2937_v28  ;;  %v3084_v7 = vsub.f32 %v106_v31, %v3072_v50 }
  0x5c   :  { %v4149_v41 = vand.u32 4294901760, %v3056_v6 }
  0x5d   :  { %479 = vmatpush.xpose.msrb.mxu0 %v271_v13  ;;  %358 = vmatpush.xpose.msra.mxu1 %v357_v12  ;;  %v3066_v13 = vand.u32 4294901760, %v2974_v1  ;;  %v3086_v12 = vand.u32 4294901760, %v104_v9 }
  0x5e   :  { %646 = vmatpush.xpose.msrb.mxu3 %v645_v43  ;;  %v662_v43 = vsub.f32 %v3040_v47, %v4150_v20  ;;  %v668_v16 = vsub.f32 %v3056_v6, %v4149_v41 }
  0x5f   :  { %589 = vmatpush.xpose.msrb.mxu2 %v2950_v44  ;;  %v3100_v31 = vsub.f32 %v2974_v1, %v3066_v13  ;;  %v4214_v1 = vand.u32 4294901760, %v2848_v30  ;;  %v98_v30 = vld [vmem:[#allocation7 + $0x48] sm:$0xff] }
  0x60   :  { %360 = vmatmul.f32.vlgmr.msra.gmra.mxu1 %v3066_v13  ;;  %v663_v25 = vand.u32 4294901760, %v662_v43  ;;  %v4151_v43 = vand.u32 4294901760, %v3084_v7 }
  0x61   :  { %483 = vmatpush.xpose.msrb.mxu0 %v277_v18  ;;  %546 = vmatpush.xpose.msrb.mxu1 %v2792_v3  ;;  %v4212_v3 = vand.u32 4294901760, %v2825_v17  ;;  %v4148_v18 = vand.u32 4294901760, %v3063_v8  ;;  %v4213_v17 = vand.u32 4294901760, %v2836_v24  ;;  %v3104_v24 = vsub.f32 %v104_v9, %v3086_v12 }
  0x62   :  { %652 = vmatpush.xpose.msrb.mxu3 %v651_v40  ;;  %v102_v40 = vld [vmem:[#allocation7 + $0x68] sm:$0xff]  ;;  %418 = vmatmul.f32.vlgmr.msra.gmra.mxu2 %v3100_v31 }
  0x63   :  { %591 = vmatpush.xpose.msrb.mxu2 %v2970_v62 }
  0x65   :  { %487 = vmatpush.xpose.msrb.mxu0 %v4212_v3  ;;  %548 = vmatpush.xpose.msrb.mxu1 %v2794_v4  ;;  %v674_v4 = vsub.f32 %v3063_v8, %v4148_v18  ;;  %v3106_v3 = vand.u32 4294901760, %v102_v40  ;;  %v4153_v18 = vand.u32 4294901760, %v3104_v24 }
  0x66   :  { %658 = vmatpush.xpose.msrb.mxu3 %v657_v37  ;;  %v669_v37 = vand.u32 4294901760, %v668_v16  ;;  %v680_v16 = vsub.f32 %v3084_v7, %v4151_v43 }
  0x67   :  { %593 = vmatpush.xpose.msrb.mxu2 %v2999_v52  ;;  %v3124_v41 = vsub.f32 %v102_v40, %v3106_v3  ;;  %v3139_v40 = vsub.f32 %v3019_v34, %v3096_v58  ;;  %v4217_v34 = vand.u32 4294901760, %v2872_v42  ;;  %v94_v42 = vld [vmem:[#allocation7 + $0x28] sm:$0xff] }
  0x68   :  { %364 = vmatmul.f32.gmra.mxu1 %v3096_v58 }
  0x69   :  { %491 = vmatpush.xpose.msrb.mxu0 %v4213_v17  ;;  %550 = vmatpush.xpose.msrb.mxu1 %v2796_v5  ;;  %v100_v5 = vld [vmem:[#allocation7 + $0x58] sm:$0xff]  ;;  %v3110_v17 = vand.u32 4294901760, %v3100_v31  ;;  %v4155_v43 = vand.u32 4294901760, %v3124_v41 }
  0x6a   :  { %664 = vmatpush.xpose.msrb.mxu3 %v663_v25  ;;  %v675_v25 = vand.u32 4294901760, %v674_v4  ;;  %v3126_v20 = vand.u32 4294901760, %v100_v5  ;;  %v4215_v4 = vand.u32 4294901760, %v2860_v36  ;;  %v3151_v36 = vand.u32 4294901760, %v3139_v40  ;;  %423 = vmatmul.f32.gmra.mxu2 %v3139_v40 }
  0x6b   :  { %595 = vmatpush.xpose.msrb.mxu2 %v3017_v29  ;;  %v249_v9 = vsub.f32 %v3100_v31, %v3110_v17  ;;  %462 = vmatmul.f32.vlgmr.msra.gmra.mxu3 %v3110_v17 }
  0x6c   :  { %v3146_v61 = vsub.f32 %v100_v5, %v3126_v20  ;;  %4216 = vst [vmem:[#allocation20_spill] sm:$0xff] %v3151_v36  ;;  %v257_v5 = vsub.f32 %v3139_v40, %v3151_v36 }
  0x6d   :  { %495 = vmatpush.xpose.msrb.mxu0 %v4214_v1  ;;  %552 = vmatpush.xpose.msrb.mxu1 %v2809_v10  ;;  %v3129_v10 = vand.u32 4294901760, %v249_v9  ;;  %v681_v1 = vand.u32 4294901760, %v680_v16  ;;  %v686_v9 = vsub.f32 %v3104_v24, %v4153_v18 }
  0x6e   :  { %670 = vmatpush.xpose.msrb.mxu3 %v669_v37  ;;  %v3135_v37 = vand.u32 4294901760, %v98_v30  ;;  %v4156_v18 = vand.u32 4294901760, %v3146_v61 }
  0x6f   :  { %597 = vmatpush.xpose.msrb.mxu2 %v3042_v19  ;;  %251 = vmatmul.f32.vlgmr.msra.gmra.mxu0 %v3129_v10  ;;  %v687_v16 = vand.u32 4294901760, %v686_v9 }
  0x71   :  { %499 = vmatpush.xpose.msrb.mxu0 %v4215_v4  ;;  %554 = vmatpush.xpose.msrb.mxu1 %v2814_v14  ;;  %v96_v14 = vld [vmem:[#allocation7 + $0x38] sm:$0xff]  ;;  %v692_v4 = vsub.f32 %v3124_v41, %v4155_v43 }
  0x72   :  { %676 = vmatpush.xpose.msrb.mxu3 %v675_v25  ;;  %v3158_v25 = vsub.f32 %v98_v30, %v3135_v37  ;;  %v3166_v0 = vand.u32 4294901760, %v96_v14  ;;  %v4218_v30 = vand.u32 4294901760, %v2878_v45  ;;  %v92_v45 = vld [vmem:[#allocation7 + $0x18] sm:$0xff] }
  0x73   :  { %599 = vmatpush.xpose.msrb.mxu2 %v3049_v49  ;;  %468 = vmatmul.f32.gmra.mxu3 %v3151_v36  ;;  %v693_v9 = vand.u32 4294901760, %v692_v4  ;;  %v90_v36 = vld [vmem:[#allocation7 + $0x8] sm:$0xff] }
  0x74   :  { %v3180_v43 = vsub.f32 %v96_v14, %v3166_v0 }
  0x75   :  { %503 = vmatpush.xpose.msrb.mxu0 %v4217_v34  ;;  %556 = vmatpush.xpose.msrb.mxu1 %v2829_v21  ;;  %v3169_v21 = vand.u32 4294901760, %v257_v5  ;;  %v698_v34 = vsub.f32 %v3146_v61, %v4156_v18  ;;  %v3182_v5 = vand.u32 4294901760, %v94_v42  ;;  %v3196_v18 = vand.u32 4294901760, %v92_v45 }
  0x76   :  { %682 = vmatpush.xpose.msrb.mxu3 %v681_v1  ;;  %v703_v1 = vand.u32 4294901760, %v3158_v25  ;;  %v4158_v14 = vand.u32 4294901760, %v3180_v43 }
  0x77   :  { %601 = vmatpush.xpose.msrb.mxu2 %v3072_v50  ;;  %259 = vmatmul.f32.gmra.mxu0 %v3169_v21  ;;  %v699_v4 = vand.u32 4294901760, %v698_v34 }
  0x79   :  { %507 = vmatpush.xpose.msrb.mxu0 %v4218_v30  ;;  %558 = vmatpush.xpose.msrb.mxu1 %v2841_v27  ;;  %v4219_v27 = vand.u32 4294901760, %v2896_v54  ;;  %v3194_v30 = vsub.f32 %v94_v42, %v3182_v5  ;;  %v4220_v54 = vand.u32 4294901760, %v2908_v60  ;;  %v3207_v42 = vsub.f32 %v92_v45, %v3196_v18 }
  0x7a   :  { %688 = vmatpush.xpose.msrb.mxu3 %v687_v16  ;;  %v704_v16 = vsub.f32 %v3158_v25, %v703_v1  ;;  %v3213_v60 = vand.u32 4294901760, %v2976_v11 }
  0x7b   :  { %603 = vmatpush.xpose.msrb.mxu2 %v3086_v12  ;;  %v715_v34 = vand.u32 4294901760, %v3194_v30  ;;  %v721_v45 = vand.u32 4294901760, %v3207_v42 }
  0x7c   :  { %4221 = vst [vmem:[#allocation21_spill] sm:$0xff] %v3213_v60 }
  0x7d   :  { %511 = vmatpush.xpose.msrb.mxu0 %v4219_v27  ;;  %560 = vmatpush.xpose.msrb.mxu1 %v2853_v33  ;;  %v705_v33 = vand.u32 4294901760, %v704_v16  ;;  %v3209_v27 = vand.u32 4294901760, %v90_v36 }
  0x7e   :  { %694 = vmatpush.xpose.msrb.mxu3 %v693_v9  ;;  %v710_v9 = vsub.f32 %v3180_v43, %v4158_v14  ;;  %v4223_v14 = vand.u32 4294901760, %v2931_v22 }
  0x7f   :  { %605 = vmatpush.xpose.msrb.mxu2 %v3106_v3 }
  0x80   :  { %v711_v16 = vand.u32 4294901760, %v710_v9  ;;  %v3235_v9 = vsub.f32 %v2976_v11, %v3213_v60  ;;  %v4227_v11 = vand.u32 4294901760, %v2961_v53  ;;  %v4237_v53 = vand.u32 4294901760, %v3056_v6 }
  0x81   :  { %515 = vmatpush.xpose.msrb.mxu0 %v4220_v54  ;;  %562 = vmatpush.xpose.msrb.mxu1 %v2865_v39  ;;  %v4222_v39 = vand.u32 4294901760, %v2914_v63  ;;  %v3223_v54 = vsub.f32 %v90_v36, %v3209_v27  ;;  %v722_v63 = vsub.f32 %v3207_v42, %v721_v45  ;;  %v4225_v36 = vand.u32 4294901760, %v2944_v35 }
  0x82   :  { %700 = vmatpush.xpose.msrb.mxu3 %v699_v4  ;;  %v716_v4 = vsub.f32 %v3194_v30, %v715_v34  ;;  %4224 = vst [vmem:[#allocation22_spill] sm:$0xff] %v3235_v9 }
  0x83   :  { %607 = vmatpush.xpose.msrb.mxu2 %v3126_v20 }
  0x85   :  { %519 = vmatpush.xpose.msrb.mxu0 %v4222_v39  ;;  %564 = vmatpush.xpose.msrb.mxu1 %v2884_v48  ;;  %v717_v48 = vand.u32 4294901760, %v716_v4  ;;  %v4228_v39 = vand.u32 4294901760, %v2987_v32  ;;  %v4241_v32 = vand.u32 4294901760, %v3084_v7 }
  0x86   :  { %706 = vmatpush.xpose.msrb.mxu3 %v705_v33  ;;  %v727_v33 = vand.u32 4294901760, %v3223_v54 }
  0x87   :  { %609 = vmatpush.xpose.msrb.mxu2 %v3135_v37 }
  0x88   :  { %v728_v22 = vsub.f32 %v3223_v54, %v727_v33 }
  0x89   :  { %523 = vmatpush.xpose.msrb.mxu0 %v4223_v14  ;;  %566 = vmatpush.xpose.msrb.mxu1 %v2889_v51  ;;  %v723_v51 = vand.u32 4294901760, %v722_v63  ;;  %v3245_v14 = vand.u32 4294901760, %v3235_v9 }
  0x8a   :  { %712 = vmatpush.xpose.msrb.mxu3 %v711_v16  ;;  %v729_v35 = vand.u32 4294901760, %v728_v22 }
  0x8b   :  { %611 = vmatpush.xpose.msrb.mxu2 %v3166_v0  ;;  %4226 = vst [vmem:[#allocation23_spill] sm:$0xff] %v3245_v14 }
  0x8d   :  { %527 = vmatpush.xpose.msrb.mxu0 %v4225_v36  ;;  %568 = vmatpush.xpose.msrb.mxu1 %v2901_v57  ;;  %v621_v57 = vsub.f32 %v3235_v9, %v3245_v14 }
  0x8e   :  { %718 = vmatpush.xpose.msrb.mxu3 %v717_v48 }
  0x8f   :  { %613 = vmatpush.xpose.msrb.mxu2 %v3182_v5  ;;  %v3258_v16 = vand.u32 4294901760, %v621_v57 }
  0x91   :  { %531 = vmatpush.xpose.msrb.mxu0 %v4227_v11  ;;  %570 = vmatpush.xpose.msrb.mxu1 %v2920_v2  ;;  %4229 = vst [vmem:[#allocation24_spill] sm:$0xff] %v3258_v16  ;;  %v4230_v2 = vand.u32 4294901760, %v2954_v46  ;;  %v139_v11 = vld [vmem:[#allocation7 + $0x190] sm:$0xff] }
  0x92   :  { %724 = vmatpush.xpose.msrb.mxu3 %v723_v51 }
  0x93   :  { %615 = vmatpush.xpose.msrb.mxu2 %v3196_v18 }
  0x95   :  { %535 = vmatpush.xpose.msrb.mxu0 %v4228_v39  ;;  %572 = vmatpush.xpose.msrb.mxu1 %v2933_v23  ;;  %v4231_v23 = vand.u32 4294901760, %v2968_v59 }
  0x96   :  { %730 = vmatpush.xpose.msrb.mxu3 %v729_v35 }
  0x97   :  { %617 = vmatpush.xpose.msrb.mxu2 %v3209_v27 }
  0x98   :  { %537 = vmatmul.f32.vlgmr.msrb.gmra.mxu0 %v3066_v13 }
  0x99   :  { %742 = vmatpush.xpose.msra.mxu0 %v2954_v46  ;;  %574 = vmatpush.xpose.msrb.mxu1 %v2946_v38  ;;  %v3276_v46 = vand.u32 4294901760, %v3021_v55  ;;  %v4233_v38 = vand.u32 4294901760, %v2993_v15 }
  0x9a   :  { %918 = vmatpush.xpose.msra.mxu3 %v2937_v28  ;;  %623 = vmatmul.f32.vlgmr.msrb.gmra.mxu2 %v3258_v16 }
  0x9b   :  { %847 = vmatpush.xpose.msra.mxu2 %v4230_v2  ;;  %732 = vmatmul.f32.vlgmr.msrb.gmra.mxu3 %v3213_v60  ;;  %4232 = vst [vmem:[#allocation25_spill] sm:$0xff] %v3276_v46 }
  0x9d   :  { %745 = vmatpush.xpose.msra.mxu0 %v2968_v59  ;;  %576 = vmatpush.xpose.msrb.mxu1 %v2963_v56 }
  0x9e   :  { %920 = vmatpush.xpose.msra.mxu3 %v2950_v44 }
  0x9f   :  { %851 = vmatpush.xpose.msra.mxu2 %v4231_v23  ;;  %v137_v23 = vld [vmem:[#allocation7 + $0x180] sm:$0xff] }
  0xa0   :  { %578 = vmatmul.f32.vlgmr.msrb.gmra.mxu1 %v3066_v13  ;;  %541 = vmatmul.f32.gmra.mxu0 %v3096_v58 }
  0xa1   :  { %748 = vmatpush.xpose.msra.mxu0 %v2993_v15  ;;  %800 = vmatpush.xpose.msra.mxu1 %v2937_v28  ;;  %v4234_v28 = vand.u32 4294901760, %v3015_v26  ;;  %v4235_v15 = vand.u32 4294901760, %v3040_v47 }
  0xa2   :  { %922 = vmatpush.xpose.msra.mxu3 %v2970_v62 }
  0xa3   :  { %855 = vmatpush.xpose.msra.mxu2 %v4233_v38  ;;  %736 = vmatmul.f32.gmra.mxu3 %v3276_v46 }
  0xa5   :  { %751 = vmatpush.xpose.msra.mxu0 %v3015_v26  ;;  %802 = vmatpush.xpose.msra.mxu1 %v2950_v44  ;;  %v3299_v44 = vsub.f32 %v3021_v55, %v3276_v46  ;;  %v4239_v55 = vand.u32 4294901760, %v3063_v8  ;;  %v4244_v26 = vand.u32 4294901760, %v3146_v61 }
  0xa6   :  { %924 = vmatpush.xpose.msra.mxu3 %v2999_v52 }
  0xa7   :  { %859 = vmatpush.xpose.msra.mxu2 %v4234_v28  ;;  %4236 = vst [vmem:[#allocation26_spill] sm:$0xff] %v3299_v44  ;;  %v3305_v56 = vand.u32 4294901760, %v3299_v44 }
  0xa8   :  { %582 = vmatmul.f32.gmra.mxu1 %v3096_v58 }
  0xa9   :  { %754 = vmatpush.xpose.msra.mxu0 %v3040_v47  ;;  %804 = vmatpush.xpose.msra.mxu1 %v2970_v62  ;;  %4238 = vst [vmem:[#allocation27_spill] sm:$0xff] %v3305_v56  ;;  %v629_v59 = vsub.f32 %v3299_v44, %v3305_v56 }
  0xaa   :  { %926 = vmatpush.xpose.msra.mxu3 %v3017_v29 }
  0xab   :  { %863 = vmatpush.xpose.msra.mxu2 %v4235_v15  ;;  %v3314_v62 = vand.u32 4294901760, %v629_v59 }
  0xad   :  { %757 = vmatpush.xpose.msra.mxu0 %v3056_v6  ;;  %806 = vmatpush.xpose.msra.mxu1 %v2999_v52  ;;  %4240 = vst [vmem:[#allocation28_spill] sm:$0xff] %v3314_v62  ;;  %v4242_v52 = vand.u32 4294901760, %v3104_v24  ;;  %v4245_v6 = vand.u32 4294901760, %v3180_v43 }
  0xae   :  { %928 = vmatpush.xpose.msra.mxu3 %v3042_v19  ;;  %631 = vmatmul.f32.gmra.mxu2 %v3314_v62 }
  0xaf   :  { %867 = vmatpush.xpose.msra.mxu2 %v4237_v53  ;;  %v3441_v53 = vand.u32 4294901760, %v137_v23 }
  0xb1   :  { %760 = vmatpush.xpose.msra.mxu0 %v3063_v8  ;;  %808 = vmatpush.xpose.msra.mxu1 %v3017_v29  ;;  %v151_v29 = vld [vmem:[#allocation7 + $0x1f0] sm:$0xff] }
  0xb2   :  { %930 = vmatpush.xpose.msra.mxu3 %v3049_v49 }
  0xb3   :  { %871 = vmatpush.xpose.msra.mxu2 %v4239_v55  ;;  %v135_v55 = vld [vmem:[#allocation7 + $0x170] sm:$0xff] }
  0xb5   :  { %763 = vmatpush.xpose.msra.mxu0 %v3084_v7  ;;  %810 = vmatpush.xpose.msra.mxu1 %v3042_v19  ;;  %v4243_v19 = vand.u32 4294901760, %v3124_v41 }
  0xb6   :  { %932 = vmatpush.xpose.msra.mxu3 %v3072_v50 }
  0xb7   :  { %875 = vmatpush.xpose.msra.mxu2 %v4241_v32 }
  0xb9   :  { %766 = vmatpush.xpose.msra.mxu0 %v3104_v24  ;;  %812 = vmatpush.xpose.msra.mxu1 %v3049_v49  ;;  %v149_v49 = vld [vmem:[#allocation7 + $0x1e0] sm:$0xff] }
  0xba   :  { %934 = vmatpush.xpose.msra.mxu3 %v3086_v12  ;;  %v3352_v8 = vand.u32 4294901760, %v149_v49 }
  0xbb   :  { %879 = vmatpush.xpose.msra.mxu2 %v4242_v52 }
  0xbc   :  { %v3363_v7 = vsub.f32 %v149_v49, %v3352_v8 }
  0xbd   :  { %769 = vmatpush.xpose.msra.mxu0 %v3124_v41  ;;  %814 = vmatpush.xpose.msra.mxu1 %v3072_v50  ;;  %v197_v47 = vpop.xlane.xlu0 %196  ;;  %v147_v41 = vld [vmem:[#allocation7 + $0x1d0] sm:$0xff]  ;;  %v2733_v50 = vmov 0  }
  0xbe   :  { %936 = vmatpush.xpose.msra.mxu3 %v3106_v3  ;;  %202 = vst.msk [vmem:[#allocation2] sm:$0xff] %vm201_vm0, %v197_v47  ;;  %2494 = vset.pattern.permute.xlu1 %v2733_v50  ;;  %v3366_v24 = vand.u32 4294901760, %v147_v41  ;;  %v133_v47 = vld [vmem:[#allocation7 + $0x160] sm:$0xff] }
  0xbf   :  { %883 = vmatpush.xpose.msra.mxu2 %v4243_v19  ;;  %2495 = vset.pattern.permute.xlu0 %v2733_v50  ;;  %v3466_v50 = vand.u32 4294901760, %v133_v47 }
  0xc1   :  { %772 = vmatpush.xpose.msra.mxu0 %v3146_v61  ;;  %816 = vmatpush.xpose.msra.mxu1 %v3086_v12  ;;  %v3345_v61 = vand.u32 4294901760, %v151_v29 }
  0xc2   :  { %938 = vmatpush.xpose.msra.mxu3 %v3126_v20 }
  0xc3   :  { %887 = vmatpush.xpose.msra.mxu2 %v4244_v26  ;;  %v3453_v26 = vsub.f32 %v137_v23, %v3441_v53 }
  0xc5   :  { %775 = vmatpush.xpose.msra.mxu0 %v3158_v25  ;;  %818 = vmatpush.xpose.msra.mxu1 %v3106_v3  ;;  %v200_v12 = vpop.xlane.xlu0 %199 }
  0xc6   :  { %940 = vmatpush.xpose.msra.mxu3 %v3135_v37  ;;  %203 = vst.msk [vmem:[#allocation2 + $0x8] sm:$0xff] %vm201_vm0, %v200_v12  ;;  %v4161_v12 = vand.u32 4294901760, %v3453_v26 }
  0xc7   :  { %891 = vmatpush.xpose.msra.mxu2 %v703_v1  ;;  %v3381_v1 = vsub.f32 %v147_v41, %v3366_v24 }
  0xc9   :  { %778 = vmatpush.xpose.msra.mxu0 %v3180_v43  ;;  %820 = vmatpush.xpose.msra.mxu1 %v3126_v20  ;;  %v3356_v20 = vsub.f32 %v151_v29, %v3345_v61  ;;  %v1702_v43 = vld [vmem:[#allocation2] sm:$0xff]  ;;  %v4168_v48 = vand.u32 4294901760, %v3381_v1  ;;  %v3455_v29 = vand.u32 4294901760, %v135_v55 }
  0xca   :  { %942 = vmatpush.xpose.msra.mxu3 %v3166_v0  ;;  %1706 = vperm.xlu1 %2494, %v1702_v43   ;;  %v131_v43 = vld [vmem:[#allocation7 + $0x150] sm:$0xff] }
  0xcb   :  { %895 = vmatpush.xpose.msra.mxu2 %v4245_v6  ;;  %v4171_v3 = vand.u32 4294901760, %v3356_v20  ;;  %v3464_v41 = vsub.f32 %v135_v55, %v3455_v29 }
  0xcd   :  { %781 = vmatpush.xpose.msra.mxu0 %v3194_v30  ;;  %822 = vmatpush.xpose.msra.mxu1 %v3135_v37  ;;  %v145_v37 = vld [vmem:[#allocation7 + $0x1c0] sm:$0xff]  ;;  %v1010_v25 = vsub.f32 %v3356_v20, %v4171_v3 }
  0xce   :  { %944 = vmatpush.xpose.msra.mxu3 %v3182_v5  ;;  %v3383_v30 = vand.u32 4294901760, %v145_v37 }
  0xcf   :  { %899 = vmatpush.xpose.msra.mxu2 %v715_v34  ;;  %v1011_v4 = vand.u32 4294901760, %v1010_v25 }
  0xd1   :  { %784 = vmatpush.xpose.msra.mxu0 %v3207_v42  ;;  %824 = vmatpush.xpose.msra.mxu1 %v3166_v0  ;;  %v4169_v0 = vand.u32 4294901760, %v3363_v7  ;;  %v1703_v42 = vld [vmem:[#allocation2 + $0x8] sm:$0xff] }
  0xd2   :  { %946 = vmatpush.xpose.msra.mxu3 %v3196_v18  ;;  %1711 = vperm.xlu1 %2494, %v1703_v42   ;;  %v3478_v42 = vand.u32 4294901760, %v131_v43 }
  0xd3   :  { %903 = vmatpush.xpose.msra.mxu2 %v721_v45  ;;  %v1016_v34 = vsub.f32 %v3363_v7, %v4169_v0  ;;  %v3398_v45 = vsub.f32 %v145_v37, %v3383_v30 }
  0xd5   :  { %787 = vmatpush.xpose.msra.mxu0 %v3223_v54  ;;  %826 = vmatpush.xpose.msra.mxu1 %v3182_v5  ;;  %v143_v5 = vld [vmem:[#allocation7 + $0x1b0] sm:$0xff]  ;;  %v1017_v63 = vand.u32 4294901760, %v1016_v34  ;;  %v4167_v22 = vand.u32 4294901760, %v3398_v45  ;;  %v3476_v34 = vsub.f32 %v133_v47, %v3466_v50 }
  0xd6   :  { %948 = vmatpush.xpose.msra.mxu3 %v3209_v27  ;;  %v3400_v54 = vand.u32 4294901760, %v143_v5 }
  0xd7   :  { %907 = vmatpush.xpose.msra.mxu2 %v727_v33  ;;  %v1022_v33 = vsub.f32 %v3381_v1, %v4168_v48  ;;  %v1028_v57 = vsub.f32 %v3398_v45, %v4167_v22  ;;  %v4159_v55 = vand.u32 4294901760, %v3476_v34 }
  0xd8   :  { %790 = vmatmul.f32.vlgmr.msra.gmra.mxu0 %v3235_v9  ;;  %v3411_v36 = vsub.f32 %v143_v5, %v3400_v54  ;;  %v1052_v5 = vsub.f32 %v3453_v26, %v4161_v12 }
  0xd9   :  { %959 = vmatpush.xpose.msrb.mxu0 %v3345_v61  ;;  %828 = vmatpush.xpose.msra.mxu1 %v3196_v18  ;;  %v141_v18 = vld [vmem:[#allocation7 + $0x1a0] sm:$0xff]  ;;  %v1023_v35 = vand.u32 4294901760, %v1022_v33  ;;  %v1029_v28 = vand.u32 4294901760, %v1028_v57 }
  0xda   :  { %1172 = vmatpush.xpose.msrb.mxu3 %v3345_v61  ;;  %909 = vmatmul.f32.vlgmr.msra.gmra.mxu2 %v3213_v60  ;;  %v3413_v51 = vand.u32 4294901760, %v141_v18  ;;  %v4165_v2 = vand.u32 4294901760, %v3411_v36  ;;  %v1053_v23 = vand.u32 4294901760, %v1052_v5 }
  0xdb   :  { %1114 = vmatpush.xpose.msrb.mxu2 %v3356_v20  ;;  %950 = vmatmul.f32.vlgmr.msra.gmra.mxu3 %v3213_v60 }
  0xdc   :  { %v3428_v39 = vsub.f32 %v141_v18, %v3413_v51  ;;  %v1034_v15 = vsub.f32 %v3411_v36, %v4165_v2  ;;  %v129_v18 = vld [vmem:[#allocation7 + $0x140] sm:$0xff] }
  0xdd   :  { %961 = vmatpush.xpose.msrb.mxu0 %v3352_v8  ;;  %830 = vmatpush.xpose.msra.mxu1 %v3209_v27  ;;  %v3421_v27 = vand.u32 4294901760, %v139_v11  ;;  %v361_v25 = vpop.f32.mrf.mxu1 }
  0xde   :  { %1174 = vmatpush.xpose.msrb.mxu3 %v3352_v8  ;;  %v4164_v59 = vand.u32 4294901760, %v3428_v39  ;;  %v1035_v52 = vand.u32 4294901760, %v1034_v15  ;;  %v3490_v15 = vsub.f32 %v131_v43, %v3478_v42  ;;  %v1064_v43 = vsub.f32 %v3476_v34, %v4159_v55 }
  0xdf   :  { %1117 = vmatpush.xpose.msrb.mxu2 %v3363_v7  ;;  %v3435_v38 = vsub.f32 %v139_v11, %v3421_v27 }
  0xe0   :  { %795 = vmatmul.f32.gmra.mxu0 %v3299_v44  ;;  %834 = vmatmul.f32.vlgmr.msra.gmra.mxu1 %v3245_v14  ;;  %v1040_v19 = vsub.f32 %v3428_v39, %v4164_v59 }
  0xe1   :  { %963 = vmatpush.xpose.msrb.mxu0 %v3366_v24  ;;  %1012 = vmatpush.xpose.msrb.mxu1 %v1011_v4  ;;  %v4162_v32 = vand.u32 4294901760, %v3435_v38  ;;  %v4160_v4 = vand.u32 4294901760, %v3464_v41 }
  0xe2   :  { %1176 = vmatpush.xpose.msrb.mxu3 %v3366_v24  ;;  %913 = vmatmul.f32.gmra.mxu2 %v3276_v46  ;;  %v1041_v6 = vand.u32 4294901760, %v1040_v19  ;;  %v127_v19 = vld [vmem:[#allocation7 + $0x130] sm:$0xff] }
  0xe3   :  { %1120 = vmatpush.xpose.msrb.mxu2 %v3381_v1  ;;  %954 = vmatmul.f32.gmra.mxu3 %v3276_v46  ;;  %v1046_v49 = vsub.f32 %v3435_v38, %v4162_v32 }
  0xe5   :  { %965 = vmatpush.xpose.msrb.mxu0 %v3383_v30  ;;  %1018 = vmatpush.xpose.msrb.mxu1 %v1017_v63  ;;  %v1047_v37 = vand.u32 4294901760, %v1046_v49  ;;  %v419_v11 = vpop.f32.mrf.mxu2 }
  0xe6   :  { %1178 = vmatpush.xpose.msrb.mxu3 %v3383_v30 }
  0xe7   :  { %1123 = vmatpush.xpose.msrb.mxu2 %v3398_v45 }
  0xe8   :  { %840 = vmatmul.f32.gmra.mxu1 %v3305_v56 }
  0xe9   :  { %967 = vmatpush.xpose.msrb.mxu0 %v3400_v54  ;;  %1024 = vmatpush.xpose.msrb.mxu1 %v1023_v35  ;;  %v3483_v35 = vand.u32 4294901760, %v129_v18 }
  0xea   :  { %1180 = vmatpush.xpose.msrb.mxu3 %v3400_v54 }
  0xeb   :  { %1126 = vmatpush.xpose.msrb.mxu2 %v3411_v36  ;;  %v3498_v49 = vsub.f32 %v129_v18, %v3483_v35 }
  0xec   :  { %v252_v63 = vpop.f32.mrf.mxu0 }
  0xed   :  { %969 = vmatpush.xpose.msrb.mxu0 %v3413_v51  ;;  %1030 = vmatpush.xpose.msrb.mxu1 %v1029_v28  ;;  %v362_v33 = vadd.f32 %v361_v25, %v252_v63  ;;  %v1058_v28 = vsub.f32 %v3464_v41, %v4160_v4  ;;  %v4163_v25 = vand.u32 4294901760, %v3490_v15  ;;  %v365_v63 = vpop.f32.mrf.mxu1  ;;  %v424_v18 = vpop.f32.mrf.mxu2 }
  0xee   :  { %1182 = vmatpush.xpose.msrb.mxu3 %v3413_v51 }
  0xef   :  { %1129 = vmatpush.xpose.msrb.mxu2 %v3428_v39  ;;  %v420_v57 = vadd.f32 %v419_v11, %v362_v33  ;;  %v125_v33 = vld [vmem:[#allocation7 + $0x120] sm:$0xff]  ;;  %v1070_v55 = vsub.f32 %v3490_v15, %v4163_v25 }
  0xf0   :  { %v3517_v12 = vand.u32 4294901760, %v125_v33 }
  0xf1   :  { %971 = vmatpush.xpose.msrb.mxu0 %v3421_v27  ;;  %1036 = vmatpush.xpose.msrb.mxu1 %v1035_v52  ;;  %v463_v52 = vpop.f32.mrf.mxu3 }
  0xf2   :  { %1184 = vmatpush.xpose.msrb.mxu3 %v3421_v27  ;;  %v3494_v47 = vadd.f32 %v463_v52, %v420_v57  ;;  %v4166_v57 = vand.u32 4294901760, %v3498_v49  ;;  %v1065_v52 = vand.u32 4294901760, %v1064_v43  ;;  %v3530_v43 = vsub.f32 %v125_v33, %v3517_v12 }
  0xf3   :  { %1132 = vmatpush.xpose.msrb.mxu2 %v3435_v38 }
  0xf4   :  { %v260_v5 = vpop.f32.mrf.mxu0  ;;  %v4174_v48 = vand.u32 4294901760, %v3530_v43 }
  0xf5   :  { %973 = vmatpush.xpose.msrb.mxu0 %v3441_v53  ;;  %1042 = vmatpush.xpose.msrb.mxu1 %v1041_v6  ;;  %v1059_v6 = vand.u32 4294901760, %v1058_v28  ;;  %v366_v11 = vadd.f32 %v365_v63, %v260_v5  ;;  %v123_v63 = vld [vmem:[#allocation7 + $0x110] sm:$0xff] }
  0xf6   :  { %1186 = vmatpush.xpose.msrb.mxu3 %v3441_v53  ;;  %v3532_v25 = vand.u32 4294901760, %v123_v63 }
  0xf7   :  { %1135 = vmatpush.xpose.msrb.mxu2 %v3453_v26  ;;  %v425_v28 = vadd.f32 %v424_v18, %v366_v11  ;;  %v150_v18 = vld [vmem:[#allocation7 + $0x1e8] sm:$0xff] }
  0xf8   :  { %v3536_v59 = vand.u32 4294901760, %v150_v18  ;;  %v3547_v33 = vsub.f32 %v123_v63, %v3532_v25 }
  0xf9   :  { %975 = vmatpush.xpose.msrb.mxu0 %v3455_v29  ;;  %1048 = vmatpush.xpose.msrb.mxu1 %v1047_v37  ;;  %v3504_v37 = vand.u32 4294901760, %v127_v19  ;;  %v469_v5 = vpop.f32.mrf.mxu3 }
  0xfa   :  { %1188 = vmatpush.xpose.msrb.mxu3 %v3455_v29  ;;  %v3520_v32 = vadd.f32 %v469_v5, %v425_v28  ;;  %v121_v5 = vld [vmem:[#allocation7 + $0x100] sm:$0xff] }
  0xfb   :  { %1138 = vmatpush.xpose.msrb.mxu2 %v3464_v41  ;;  %v3515_v4 = vsub.f32 %v127_v19, %v3504_v37  ;;  %v1071_v19 = vand.u32 4294901760, %v1070_v55  ;;  %v3549_v22 = vand.u32 4294901760, %v121_v5 }
  0xfd   :  { %977 = vmatpush.xpose.msrb.mxu0 %v3466_v50  ;;  %1054 = vmatpush.xpose.msrb.mxu1 %v1053_v23  ;;  %v152_v23 = vld [vmem:[#allocation7 + $0x1f8] sm:$0xff]  ;;  %v4170_v28 = vand.u32 4294901760, %v3515_v4  ;;  %v3565_v3 = vsub.f32 %v121_v5, %v3549_v22 }
  0xfe   :  { %1190 = vmatpush.xpose.msrb.mxu3 %v3466_v50  ;;  %v3522_v11 = vand.u32 4294901760, %v152_v23 }
  0xff   :  { %1141 = vmatpush.xpose.msrb.mxu2 %v3476_v34  ;;  %v1082_v55 = vsub.f32 %v3515_v4, %v4170_v28  ;;  %v1088_v28 = vsub.f32 %v3530_v43, %v4174_v48  ;;  %v144_v48 = vld [vmem:[#allocation7 + $0x1b8] sm:$0xff]  ;;  %v4195_v44 = vand.u32 4294901760, %v3565_v3 }
 0x100   :  { %v3539_v2 = vsub.f32 %v152_v23, %v3522_v11  ;;  %v3554_v23 = vsub.f32 %v150_v18, %v3536_v59  ;;  %v4180_v18 = vand.u32 4294901760, %v3547_v33 }
 0x101   :  { %979 = vmatpush.xpose.msrb.mxu0 %v3478_v42  ;;  %1060 = vmatpush.xpose.msrb.mxu1 %v1059_v6  ;;  %v1076_v6 = vsub.f32 %v3498_v49, %v4166_v57  ;;  %v1083_v63 = vand.u32 4294901760, %v1082_v55  ;;  %v1089_v5 = vand.u32 4294901760, %v1088_v28  ;;  %v142_v28 = vld [vmem:[#allocation7 + $0x1a8] sm:$0xff]  ;;  %v1100_v16 = vsub.f32 %v3565_v3, %v4195_v44 }
 0x102   :  { %1192 = vmatpush.xpose.msrb.mxu3 %v3478_v42  ;;  %4246 = vst [vmem:[#allocation29_spill] sm:$0xff] %v3554_v23  ;;  %v4247_v56 = vand.u32 4294901760, %v3539_v2  ;;  %v3767_v44 = vld [vmem:[#allocation7 + $0x108] sm:$0xff] }
 0x103   :  { %1144 = vmatpush.xpose.msrb.mxu2 %v3490_v15  ;;  %v1077_v57 = vand.u32 4294901760, %v1076_v6  ;;  %v1094_v6 = vsub.f32 %v3547_v33, %v4180_v18 }
 0x104   :  { %v1382_v14 = vsub.f32 %v3539_v2, %v4247_v56  ;;  %v4248_v56 = vand.u32 4294901760, %v3554_v23 }
 0x105   :  { %981 = vmatpush.xpose.msrb.mxu0 %v3483_v35  ;;  %1066 = vmatpush.xpose.msrb.mxu1 %v1065_v52  ;;  %v148_v52 = vld [vmem:[#allocation7 + $0x1d8] sm:$0xff]  ;;  %v1095_v18 = vand.u32 4294901760, %v1094_v6  ;;  %v3609_v6 = vand.u32 4294901760, %v142_v28 }
 0x106   :  { %1194 = vmatpush.xpose.msrb.mxu3 %v3483_v35  ;;  %v3557_v0 = vand.u32 4294901760, %v148_v52  ;;  %v1383_v9 = vand.u32 4294901760, %v1382_v14  ;;  %v4249_v14 = vand.u32 4294901760, %v3356_v20  ;;  %v4250_v20 = vand.u32 4294901760, %v3363_v7 }
 0x107   :  { %1147 = vmatpush.xpose.msrb.mxu2 %v3498_v49 }
 0x109   :  { %983 = vmatpush.xpose.msrb.mxu0 %v3504_v37  ;;  %1072 = vmatpush.xpose.msrb.mxu1 %v1071_v19  ;;  %v146_v19 = vld [vmem:[#allocation7 + $0x1c8] sm:$0xff] }
 0x10a   :  { %1196 = vmatpush.xpose.msrb.mxu3 %v3504_v37  ;;  %v3576_v55 = vand.u32 4294901760, %v146_v19 }
 0x10b   :  { %1150 = vmatpush.xpose.msrb.mxu2 %v3515_v4 }
 0x10c   :  { %v3590_v62 = vsub.f32 %v146_v19, %v3576_v55 }
 0x10d   :  { %985 = vmatpush.xpose.msrb.mxu0 %v3517_v12  ;;  %1078 = vmatpush.xpose.msrb.mxu1 %v1077_v57  ;;  %v3574_v57 = vsub.f32 %v148_v52, %v3557_v0  ;;  %v1388_v52 = vsub.f32 %v3554_v23, %v4248_v56  ;;  %v140_v23 = vld [vmem:[#allocation7 + $0x198] sm:$0xff] }
 0x10e   :  { %1198 = vmatpush.xpose.msrb.mxu3 %v3517_v12  ;;  %v4193_v60 = vand.u32 4294901760, %v3590_v62 }
 0x10f   :  { %1153 = vmatpush.xpose.msrb.mxu2 %v3530_v43  ;;  %v4186_v46 = vand.u32 4294901760, %v3574_v57  ;;  %v1389_v19 = vand.u32 4294901760, %v1388_v52  ;;  %v3616_v52 = vand.u32 4294901760, %v140_v23 }
 0x111   :  { %987 = vmatpush.xpose.msrb.mxu0 %v3532_v25  ;;  %1084 = vmatpush.xpose.msrb.mxu1 %v1083_v63  ;;  %v3592_v63 = vand.u32 4294901760, %v144_v48  ;;  %v1394_v56 = vsub.f32 %v3574_v57, %v4186_v46  ;;  %v3634_v7 = vsub.f32 %v140_v23, %v3616_v52 }
 0x112   :  { %1200 = vmatpush.xpose.msrb.mxu3 %v3532_v25 }
 0x113   :  { %1156 = vmatpush.xpose.msrb.mxu2 %v3547_v33 }
 0x115   :  { %989 = vmatpush.xpose.msrb.mxu0 %v3549_v22  ;;  %1090 = vmatpush.xpose.msrb.mxu1 %v1089_v5  ;;  %v3607_v5 = vsub.f32 %v144_v48, %v3592_v63  ;;  %v1395_v48 = vand.u32 4294901760, %v1394_v56  ;;  %v3643_v56 = vld [vmem:[#allocation7 + $0x178] sm:$0xff] }
 0x116   :  { %1202 = vmatpush.xpose.msrb.mxu3 %v3549_v22 }
 0x117   :  { %1159 = vmatpush.xpose.msrb.mxu2 %v3565_v3  ;;  %v4191_v46 = vand.u32 4294901760, %v3607_v5 }
 0x118   :  { %995 = vmatmul.f32.vlgmr.msrb.gmra.mxu0 %v3129_v10  ;;  %v3624_v10 = vsub.f32 %v142_v28, %v3609_v6 }
 0x119   :  { %1219 = vmatpush.xpose.msra.mxu0 %v4249_v14  ;;  %1096 = vmatpush.xpose.msrb.mxu1 %v1095_v18  ;;  %v1400_v14 = vsub.f32 %v3590_v62, %v4193_v60  ;;  %v1406_v28 = vsub.f32 %v3607_v5, %v4191_v46  ;;  %v3733_v46 = vld [vmem:[#allocation7 + $0x128] sm:$0xff]  ;;  %v3750_v60 = vld [vmem:[#allocation7 + $0x118] sm:$0xff] }
 0x11a   :  { %1384 = vmatpush.xpose.msra.mxu3 %v1383_v9  ;;  %v1101_v9 = vand.u32 4294901760, %v1100_v16  ;;  %1162 = vmatmul.f32.vlgmr.msrb.gmra.mxu2 %v3100_v31  ;;  %v3627_v16 = vld [vmem:[#allocation7 + $0x188] sm:$0xff]  ;;  %v4189_v31 = vand.u32 4294901760, %v3624_v10 }
 0x11b   :  { %1331 = vmatpush.xpose.msra.mxu2 %v3522_v11  ;;  %1206 = vmatmul.f32.vlgmr.msrb.gmra.mxu3 %v3110_v17  ;;  %v4251_v17 = vand.u32 4294901760, %v3381_v1  ;;  %v1401_v18 = vand.u32 4294901760, %v1400_v14  ;;  %v4187_v1 = vand.u32 4294901760, %v3634_v7  ;;  %v1407_v23 = vand.u32 4294901760, %v1406_v28 }
 0x11d   :  { %1223 = vmatpush.xpose.msra.mxu0 %v4250_v20  ;;  %1102 = vmatpush.xpose.msrb.mxu1 %v1101_v9  ;;  %v1412_v9 = vsub.f32 %v3624_v10, %v4189_v31  ;;  %v1418_v14 = vsub.f32 %v3634_v7, %v4187_v1  ;;  %v3699_v1 = vld [vmem:[#allocation7 + $0x148] sm:$0xff]  ;;  %v3716_v31 = vld [vmem:[#allocation7 + $0x138] sm:$0xff] }
 0x11e   :  { %1390 = vmatpush.xpose.msra.mxu3 %v1389_v19  ;;  %v3641_v19 = vand.u32 4294901760, %v3627_v16 }
 0x11f   :  { %1333 = vmatpush.xpose.msra.mxu2 %v3536_v59 }
 0x120   :  { %1104 = vmatmul.f32.vlgmr.msrb.gmra.mxu1 %v3066_v13  ;;  %1003 = vmatmul.f32.gmra.mxu0 %v3169_v21  ;;  %v3657_v20 = vsub.f32 %v3627_v16, %v3641_v19  ;;  %v3660_v21 = vand.u32 4294901760, %v3643_v56 }
 0x121   :  { %1227 = vmatpush.xpose.msra.mxu0 %v4251_v17  ;;  %1290 = vmatpush.xpose.msra.mxu1 %v3345_v61  ;;  %v4252_v61 = vand.u32 4294901760, %v3398_v45  ;;  %v3663_v45 = vld [vmem:[#allocation7 + $0x168] sm:$0xff]  ;;  %v1413_v17 = vand.u32 4294901760, %v1412_v9 }
 0x122   :  { %1396 = vmatpush.xpose.msra.mxu3 %v1395_v48  ;;  %1167 = vmatmul.f32.gmra.mxu2 %v3139_v40  ;;  %v4254_v48 = vand.u32 4294901760, %v3411_v36  ;;  %v3676_v40 = vsub.f32 %v3643_v56, %v3660_v21  ;;  %v3679_v28 = vand.u32 4294901760, %v3663_v45  ;;  %v1419_v36 = vand.u32 4294901760, %v1418_v14 }
 0x123   :  { %1335 = vmatpush.xpose.msra.mxu2 %v3557_v0 }
 0x124   :  { %v4190_v9 = vand.u32 4294901760, %v3676_v40 }
 0x125   :  { %1231 = vmatpush.xpose.msra.mxu0 %v4252_v61  ;;  %1292 = vmatpush.xpose.msra.mxu1 %v3352_v8  ;;  %v4253_v8 = vld [vmem:[#allocation20_spill] sm:$0xff] }
 0x126   :  { %1402 = vmatpush.xpose.msra.mxu3 %v1401_v18  ;;  %v4188_v18 = vand.u32 4294901760, %v3657_v20  ;;  %v3681_v61 = vld [vmem:[#allocation7 + $0x158] sm:$0xff] }
 0x127   :  { %1212 = vmatmul.f32.gmra.mxu3 %v4253_v8  ;;  %1337 = vmatpush.xpose.msra.mxu2 %v3576_v55  ;;  %v3694_v8 = vsub.f32 %v3663_v45, %v3679_v28 }
 0x128   :  { %1108 = vmatmul.f32.gmra.mxu1 %v3096_v58 }
 0x129   :  { %1235 = vmatpush.xpose.msra.mxu0 %v4254_v48  ;;  %1294 = vmatpush.xpose.msra.mxu1 %v3366_v24  ;;  %v4255_v24 = vand.u32 4294901760, %v3428_v39  ;;  %v3697_v48 = vand.u32 4294901760, %v3681_v61  ;;  %v3706_v39 = vand.u32 4294901760, %v3699_v1 }
 0x12a   :  { %1408 = vmatpush.xpose.msra.mxu3 %v1407_v23  ;;  %v1424_v23 = vsub.f32 %v3657_v20, %v4188_v18 }
 0x12b   :  { %1339 = vmatpush.xpose.msra.mxu2 %v3592_v63  ;;  %v3714_v18 = vsub.f32 %v3681_v61, %v3697_v48 }
 0x12c   :  { %v1425_v14 = vand.u32 4294901760, %v1424_v23 }
 0x12d   :  { %1239 = vmatpush.xpose.msra.mxu0 %v4255_v24  ;;  %1296 = vmatpush.xpose.msra.mxu1 %v3383_v30  ;;  %v4256_v30 = vand.u32 4294901760, %v3435_v38  ;;  %v4192_v24 = vand.u32 4294901760, %v3694_v8  ;;  %v3724_v38 = vsub.f32 %v3699_v1, %v3706_v39 }
 0x12e   :  { %1414 = vmatpush.xpose.msra.mxu3 %v1413_v17  ;;  %v1430_v17 = vsub.f32 %v3676_v40, %v4190_v9  ;;  %v3731_v9 = vand.u32 4294901760, %v3716_v31 }
 0x12f   :  { %1341 = vmatpush.xpose.msra.mxu2 %v3609_v6  ;;  %v1436_v23 = vsub.f32 %v3694_v8, %v4192_v24  ;;  %v3748_v24 = vand.u32 4294901760, %v3733_v46 }
 0x131   :  { %1243 = vmatpush.xpose.msra.mxu0 %v4256_v30  ;;  %1298 = vmatpush.xpose.msra.mxu1 %v3400_v54  ;;  %v4257_v54 = vand.u32 4294901760, %v3453_v26  ;;  %v4194_v30 = vand.u32 4294901760, %v3714_v18  ;;  %v4196_v26 = vand.u32 4294901760, %v3724_v38 }
 0x132   :  { %1420 = vmatpush.xpose.msra.mxu3 %v1419_v36  ;;  %v1431_v36 = vand.u32 4294901760, %v1430_v17 }
 0x133   :  { %1343 = vmatpush.xpose.msra.mxu2 %v3616_v52  ;;  %v1442_v17 = vsub.f32 %v3714_v18, %v4194_v30  ;;  %v3765_v30 = vand.u32 4294901760, %v3750_v60 }
 0x135   :  { %1247 = vmatpush.xpose.msra.mxu0 %v4257_v54  ;;  %1300 = vmatpush.xpose.msra.mxu1 %v3413_v51  ;;  %v4258_v51 = vand.u32 4294901760, %v3464_v41  ;;  %v3745_v54 = vsub.f32 %v3716_v31, %v3731_v9  ;;  %v1448_v41 = vsub.f32 %v3724_v38, %v4196_v26  ;;  %v3782_v26 = vand.u32 4294901760, %v3767_v44 }
 0x136   :  { %1426 = vmatpush.xpose.msra.mxu3 %v1425_v14  ;;  %v1437_v14 = vand.u32 4294901760, %v1436_v23 }
 0x137   :  { %1345 = vmatpush.xpose.msra.mxu2 %v3641_v19  ;;  %v4197_v23 = vand.u32 4294901760, %v3745_v54 }
 0x139   :  { %1251 = vmatpush.xpose.msra.mxu0 %v4258_v51  ;;  %1302 = vmatpush.xpose.msra.mxu1 %v3421_v27  ;;  %v4259_v27 = vand.u32 4294901760, %v3476_v34  ;;  %v3762_v51 = vsub.f32 %v3733_v46, %v3748_v24  ;;  %v1449_v34 = vand.u32 4294901760, %v1448_v41 }
 0x13a   :  { %1432 = vmatpush.xpose.msra.mxu3 %v1431_v36  ;;  %v1443_v36 = vand.u32 4294901760, %v1442_v17 }
 0x13b   :  { %1347 = vmatpush.xpose.msra.mxu2 %v3660_v21  ;;  %v1459_v17 = vand.u32 4294901760, %v3762_v51 }
 0x13d   :  { %1255 = vmatpush.xpose.msra.mxu0 %v4259_v27  ;;  %1304 = vmatpush.xpose.msra.mxu1 %v3441_v53  ;;  %v4260_v53 = vand.u32 4294901760, %v3490_v15  ;;  %v3779_v27 = vsub.f32 %v3750_v60, %v3765_v30  ;;  %v4261_v15 = vand.u32 4294901760, %v3498_v49  ;;  %v1460_v41 = vsub.f32 %v3762_v51, %v1459_v17 }
 0x13e   :  { %1438 = vmatpush.xpose.msra.mxu3 %v1437_v14  ;;  %v1454_v14 = vsub.f32 %v3745_v54, %v4197_v23  ;;  %v4262_v23 = vand.u32 4294901760, %v3515_v4 }
 0x13f   :  { %1349 = vmatpush.xpose.msra.mxu2 %v3679_v28 }
 0x141   :  { %1259 = vmatpush.xpose.msra.mxu0 %v4260_v53  ;;  %1306 = vmatpush.xpose.msra.mxu1 %v3455_v29  ;;  %v1455_v29 = vand.u32 4294901760, %v1454_v14  ;;  %v3794_v53 = vsub.f32 %v3767_v44, %v3782_v26  ;;  %v538_v14 = vpop.f32.mrf.mxu0 }
 0x142   :  { %1444 = vmatpush.xpose.msra.mxu3 %v1443_v36  ;;  %v4198_v36 = vand.u32 4294901760, %v3779_v27 }
 0x143   :  { %1351 = vmatpush.xpose.msra.mxu2 %v3697_v48 }
 0x144   :  { %v1466_v49 = vsub.f32 %v3779_v27, %v4198_v36  ;;  %v624_v36 = vpop.f32.mrf.mxu2 }
 0x145   :  { %1263 = vmatpush.xpose.msra.mxu0 %v4261_v15  ;;  %1308 = vmatpush.xpose.msra.mxu1 %v3466_v50  ;;  %v1461_v50 = vand.u32 4294901760, %v1460_v41  ;;  %v4263_v15 = vand.u32 4294901760, %v3530_v43  ;;  %v4264_v41 = vand.u32 4294901760, %v3547_v33 }
 0x146   :  { %1450 = vmatpush.xpose.msra.mxu3 %v1449_v34  ;;  %v1471_v34 = vand.u32 4294901760, %v3794_v53  ;;  %v1467_v4 = vand.u32 4294901760, %v1466_v49 }
 0x147   :  { %1353 = vmatpush.xpose.msra.mxu2 %v3706_v39 }
 0x149   :  { %1267 = vmatpush.xpose.msra.mxu0 %v4262_v23  ;;  %1310 = vmatpush.xpose.msra.mxu1 %v3478_v42  ;;  %v1472_v42 = vsub.f32 %v3794_v53, %v1471_v34  ;;  %v579_v23 = vpop.f32.mrf.mxu1 }
 0x14a   :  { %1456 = vmatpush.xpose.msra.mxu3 %v1455_v29  ;;  %v733_v29 = vpop.f32.mrf.mxu3 }
 0x14b   :  { %1355 = vmatpush.xpose.msra.mxu2 %v3731_v9  ;;  %v1473_v43 = vand.u32 4294901760, %v1472_v42  ;;  %v4269_v42 = vld [vmem:[#allocation24_spill] sm:$0xff] }
 0x14d   :  { %1271 = vmatpush.xpose.msra.mxu0 %v4263_v15  ;;  %1312 = vmatpush.xpose.msra.mxu1 %v3483_v35  ;;  %v542_v15 = vpop.f32.mrf.mxu0  ;;  %v539_v35 = vadd.f32 %v538_v14, %v3494_v47  ;;  %v632_v14 = vpop.f32.mrf.mxu2 }
 0x14e   :  { %1462 = vmatpush.xpose.msra.mxu3 %v1461_v50  ;;  %v4265_v50 = vand.u32 4294901760, %v3565_v3  ;;  %v543_v49 = vadd.f32 %v542_v15, %v3520_v32 }
 0x14f   :  { %1357 = vmatpush.xpose.msra.mxu2 %v3748_v24  ;;  %v580_v33 = vadd.f32 %v579_v23, %v539_v35  ;;  %v4272_v35 = vld [vmem:[#allocation28_spill] sm:$0xff] }
 0x151   :  { %1275 = vmatpush.xpose.msra.mxu0 %v4264_v41  ;;  %1314 = vmatpush.xpose.msra.mxu1 %v3504_v37  ;;  %v4266_v37 = vand.u32 4294901760, %v3539_v2  ;;  %v583_v47 = vpop.f32.mrf.mxu1  ;;  %v625_v23 = vadd.f32 %v624_v36, %v580_v33  ;;  %v4271_v36 = vand.u32 4294901760, %v3574_v57 }
 0x152   :  { %1468 = vmatpush.xpose.msra.mxu3 %v1467_v4  ;;  %v737_v3 = vpop.f32.mrf.mxu3  ;;  %v4268_v4 = vld [vmem:[#allocation21_spill] sm:$0xff] }
 0x153   :  { %1359 = vmatpush.xpose.msra.mxu2 %v3765_v30  ;;  %v734_v32 = vadd.f32 %v733_v29, %v625_v23  ;;  %v4275_v23 = vand.u32 4294901760, %v3607_v5 }
 0x155   :  { %1279 = vmatpush.xpose.msra.mxu0 %v4265_v50  ;;  %1316 = vmatpush.xpose.msra.mxu1 %v3517_v12  ;;  %v4267_v12 = vld [vmem:[#allocation29_spill] sm:$0xff]  ;;  %v791_v41 = vpop.f32.mrf.mxu0 }
 0x156   :  { %1474 = vmatpush.xpose.msra.mxu3 %v1473_v43  ;;  %v3845_v43 = vld [vmem:[%s4129_s3] sm:$0x3]  ;;  %s2734_s3 = smov [#allocation12]  }
 0x157   :  { %1361 = vmatpush.xpose.msra.mxu2 %v3782_v26  ;;  %v1715_v33 = vperm.slane %v3845_v43, 0  ;;  %s2277_s19 = sshll.u32 %s2734_s3, 4  ;;  %s2278_s19 = int_to_ptr.vmem [resolvable:$true] %s2277_s19 }
 0x158   :  { %1281 = vmatmul.f32.vlgmr.msra.gmra.mxu0 %v3066_v13 }
 0x159   :  { %1486 = vmatpush.xpose.msrb.mxu0 %v3539_v2  ;;  %1318 = vmatpush.xpose.msra.mxu1 %v3532_v25  ;;  %v4270_v2 = vand.u32 4294901760, %v4267_v12  ;;  %v584_v25 = vadd.f32 %v583_v47, %v543_v49  ;;  %v4274_v47 = vand.u32 4294901760, %v3590_v62 }
 0x15a   :  { %1662 = vmatpush.xpose.msrb.mxu3 %v3522_v11  ;;  %1367 = vmatmul.f32.vlgmr.msra.gmra.mxu2 %v4269_v42 }
 0x15b   :  { %1591 = vmatpush.xpose.msrb.mxu2 %v4266_v37  ;;  %1476 = vmatmul.f32.vlgmr.msra.gmra.mxu3 %v4268_v4  ;;  %v633_v15 = vadd.f32 %v632_v14, %v584_v25  ;;  %v4273_v37 = vld [vmem:[#allocation25_spill] sm:$0xff] }
 0x15d   :  { %1489 = vmatpush.xpose.msrb.mxu0 %v4267_v12  ;;  %1320 = vmatpush.xpose.msra.mxu1 %v3549_v22  ;;  %v792_v22 = vadd.f32 %v791_v41, %v734_v32  ;;  %v910_v50 = vpop.f32.mrf.mxu2  ;;  %v738_v49 = vadd.f32 %v737_v3, %v633_v15  ;;  %v4276_v32 = vand.u32 4294901760, %v3624_v10 }
 0x15e   :  { %1664 = vmatpush.xpose.msrb.mxu3 %v3536_v59  ;;  %v951_v29 = vpop.f32.mrf.mxu3 }
 0x15f   :  { %1595 = vmatpush.xpose.msrb.mxu2 %v4270_v2 }
 0x160   :  { %1322 = vmatmul.f32.vlgmr.msra.gmra.mxu1 %v3066_v13  ;;  %1285 = vmatmul.f32.gmra.mxu0 %v3096_v58  ;;  %v835_v13 = vpop.f32.mrf.mxu1 }
 0x161   :  { %1492 = vmatpush.xpose.msrb.mxu0 %v3574_v57  ;;  %1544 = vmatpush.xpose.msrb.mxu1 %v3522_v11  ;;  %v3849_v11 = vpop.permute.xlu1 %1706  ;;  %v836_v57 = vadd.f32 %v835_v13, %v792_v22  ;;  %v4277_v13 = vand.u32 4294901760, %v3634_v7 }
 0x162   :  { %1666 = vmatpush.xpose.msrb.mxu3 %v3557_v0  ;;  %1375 = vmatmul.f32.gmra.mxu2 %v4272_v35  ;;  %v1719_v42 = vadd.f32 %v1715_v33, %v3849_v11  ;;  %v4278_v35 = vand.u32 4294901760, %v3657_v20 }
 0x163   :  { %1599 = vmatpush.xpose.msrb.mxu2 %v4271_v36  ;;  %1480 = vmatmul.f32.gmra.mxu3 %v4273_v37  ;;  %v911_v12 = vadd.f32 %v910_v50, %v836_v57  ;;  %v4279_v50 = vand.u32 4294901760, %v3676_v40 }
 0x165   :  { %1495 = vmatpush.xpose.msrb.mxu0 %v3590_v62  ;;  %1546 = vmatpush.xpose.msrb.mxu1 %v3536_v59  ;;  %v796_v59 = vpop.f32.mrf.mxu0  ;;  %v952_v14 = vadd.f32 %v951_v29, %v911_v12  ;;  %v914_v25 = vpop.f32.mrf.mxu2  ;;  %v4281_v12 = vand.u32 4294901760, %v3714_v18 }
 0x166   :  { %1668 = vmatpush.xpose.msrb.mxu3 %v3576_v55  ;;  %v797_v41 = vadd.f32 %v796_v59, %v738_v49  ;;  %v955_v36 = vpop.f32.mrf.mxu3 }
 0x167   :  { %1603 = vmatpush.xpose.msrb.mxu2 %v4274_v47  ;;  %v1723_v62 = vmul.f32 2.0, %v952_v14 }
 0x168   :  { %1326 = vmatmul.f32.gmra.mxu1 %v3096_v58 }
 0x169   :  { %1498 = vmatpush.xpose.msrb.mxu0 %v3607_v5  ;;  %1548 = vmatpush.xpose.msrb.mxu1 %v3557_v0  ;;  %v841_v0 = vpop.f32.mrf.mxu1  ;;  %v1727_v3 = vsub.f32 %v1719_v42, %v1723_v62  ;;  %v3869_v58 = vpop.permute.xlu1 %1711  ;;  %v4283_v62 = vand.u32 4294901760, %v3745_v54 }
 0x16a   :  { %1670 = vmatpush.xpose.msrb.mxu3 %v3592_v63  ;;  %v842_v2 = vadd.f32 %v841_v0, %v797_v41  ;;  %v1721_v15 = vadd.f32 %v1715_v33, %v3869_v58  ;;  %v4280_v33 = vand.u32 4294901760, %v3694_v8 }
 0x16b   :  { %1607 = vmatpush.xpose.msrb.mxu2 %v4275_v23  ;;  %v1731_v5 = vmax.f32 %v1727_v3, 0.0  ;;  %v4282_v23 = vand.u32 4294901760, %v3724_v38 }
 0x16c   :  { %v915_v22 = vadd.f32 %v914_v25, %v842_v2  ;;  %v2463_v25 = vld [vmem:[#allocation9 + $0x74] sm:$0xf0] }
 0x16d   :  { %1501 = vmatpush.xpose.msrb.mxu0 %v3624_v10  ;;  %1550 = vmatpush.xpose.msrb.mxu1 %v3576_v55  ;;  %2496 = vrsqrt.f32 %v1731_v5  ;;  %vm1742_vm1 = vcmp.eq.f32.partialorder %v1731_v5, inf  ;;  %vm1744_vm2 = vcmp.eq.f32.partialorder %v1731_v5, 0.0 }
 0x16e   :  { %1672 = vmatpush.xpose.msrb.mxu3 %v3609_v6  ;;  %v956_v55 = vadd.f32 %v955_v36, %v915_v22  ;;  %v2444_v36 = vld [vmem:[#allocation9 + $0xf8] sm:$0xf0] }
 0x16f   :  { %1611 = vmatpush.xpose.msrb.mxu2 %v4276_v32 }
 0x170   :  { %v1725_v10 = vmul.f32 2.0, %v956_v55  ;;  %v2442_v55 = vld [vmem:[#allocation9 + $0xf0] sm:$0xf] }
 0x171   :  { %1504 = vmatpush.xpose.msrb.mxu0 %v3634_v7  ;;  %1552 = vmatpush.xpose.msrb.mxu1 %v3592_v63 }
 0x172   :  { %1674 = vmatpush.xpose.msrb.mxu3 %v3616_v52  ;;  %v1729_v29 = vsub.f32 %v1721_v15, %v1725_v10  ;;  %v2479_v15 = vld [vmem:[#allocation9 + $0xf4] sm:$0xf0] }
 0x173   :  { %1615 = vmatpush.xpose.msrb.mxu2 %v4277_v13  ;;  %v2497_v63 = vpop.eup %2496 }
 0x174   :  { %v1733_v57 = vmax.f32 %v1729_v29, 0.0  ;;  %v1736_v7 = vmul.f32 %v2497_v63, %v1731_v5  ;;  %v2370_v29 = vld [vmem:[#allocation9 + $0x60] sm:$0xf] }
 0x175   :  { %1507 = vmatpush.xpose.msrb.mxu0 %v3657_v20  ;;  %1554 = vmatpush.xpose.msrb.mxu1 %v3609_v6 }
 0x176   :  { %1676 = vmatpush.xpose.msrb.mxu3 %v3641_v19  ;;  %2498 = vrsqrt.f32 %v1733_v57  ;;  %v1737_v6 = vmul.f32 %v2497_v63, %v1736_v7  ;;  %vm1766_vm3 = vcmp.eq.f32.partialorder %v1733_v57, inf  ;;  %vm1768_vm4 = vcmp.eq.f32.partialorder %v1733_v57, 0.0  ;;  %v2436_v7 = vld [vmem:[#allocation9 + $0xe8] sm:$0xf0] }
 0x177   :  { %1619 = vmatpush.xpose.msrb.mxu2 %v4278_v35  ;;  %v2461_v35 = vld [vmem:[#allocation9 + $0x64] sm:$0xf0] }
 0x178   :  { %v1738_v20 = vmul.f32 0.5, %v1737_v6 }
 0x179   :  { %1510 = vmatpush.xpose.msrb.mxu0 %v3676_v40  ;;  %1556 = vmatpush.xpose.msrb.mxu1 %v3616_v52 }
 0x17a   :  { %1678 = vmatpush.xpose.msrb.mxu3 %v3660_v21  ;;  %v1739_v47 = vsub.f32 1.5, %v1738_v20  ;;  %v2434_v20 = vld [vmem:[#allocation9 + $0xe0] sm:$0xf] }
 0x17b   :  { %1623 = vmatpush.xpose.msrb.mxu2 %v4279_v50  ;;  %v3934_v50 = vor.u32 %v2461_v35, %v2370_v29  ;;  %v2456_v29 = vld [vmem:[#allocation9 + $0x44] sm:$0xf]  ;;  %v2356_v35 = vld [vmem:[#allocation9 + $0x48] sm:$0xf0] }
 0x17c   :  { %v2499_v52 = vpop.eup %2498  ;;  %v1740_v40 = vmul.f32 %v2497_v63, %v1739_v47  ;;  %v2462_v63 = vld [vmem:[#allocation9 + $0x74] sm:$0xf] }
 0x17d   :  { %1513 = vmatpush.xpose.msrb.mxu0 %v3694_v8  ;;  %1558 = vmatpush.xpose.msrb.mxu1 %v3641_v19  ;;  %v1760_v49 = vmul.f32 %v2499_v52, %v1733_v57  ;;  %v1745_v8 = vand.u32 2147483648, %v1731_v5 }
 0x17e   :  { %1680 = vmatpush.xpose.msrb.mxu3 %v3679_v28  ;;  %v1741_v59 = vmul.f32 %v1740_v40, %v1731_v5  ;;  %v2362_v40 = vld [vmem:[#allocation9 + $0x50] sm:$0xf] }
 0x17f   :  { %1627 = vmatpush.xpose.msrb.mxu2 %v4280_v33  ;;  %v1761_v19 = vmul.f32 %v2499_v52, %v1760_v49  ;;  %v2477_v33 = vld [vmem:[#allocation9 + $0xe4] sm:$0xf0] }
 0x180   :  { %v1743_v42 = vsel %vm1742_vm1, %v1731_v5, %v1741_v59  ;;  %v2460_v59 = vld [vmem:[#allocation9 + $0x64] sm:$0xf] }
 0x181   :  { %1516 = vmatpush.xpose.msrb.mxu0 %v3714_v18  ;;  %1560 = vmatpush.xpose.msrb.mxu1 %v3660_v21  ;;  %v1762_v14 = vmul.f32 0.5, %v1761_v19  ;;  %v1746_v21 = vsel %vm1744_vm2, %v1745_v8, %v1743_v42  ;;  %v2459_v19 = vld [vmem:[#allocation9 + $0x54] sm:$0xf0]  ;;  %v2372_v8 = vld [vmem:[#allocation9 + $0x68] sm:$0xf0] }
 0x182   :  { %1682 = vmatpush.xpose.msrb.mxu3 %v3697_v48  ;;  %v1783_v18 = vmul.f32 0.2236068, %v1746_v21  ;;  %v2474_v42 = vld [vmem:[#allocation9 + $0xd4] sm:$0xf]  ;;  %v2428_v21 = vld [vmem:[#allocation9 + $0xd8] sm:$0xf0] }
 0x183   :  { %1631 = vmatpush.xpose.msrb.mxu2 %v4281_v12  ;;  %v1763_v41 = vsub.f32 1.5, %v1762_v14  ;;  %v4290_v14 = vld [vmem:[#allocation26_spill] sm:$0xff] }
 0x184   :  { %v2028_v3 = vsub.f32 0.0, %v1783_v18 }
 0x185   :  { %1519 = vmatpush.xpose.msrb.mxu0 %v3724_v38  ;;  %1562 = vmatpush.xpose.msrb.mxu1 %v3679_v28  ;;  %v1764_v28 = vmul.f32 %v2499_v52, %v1763_v41  ;;  %v1769_v38 = vand.u32 2147483648, %v1733_v57  ;;  %v3965_v41 = vor.u32 %v2459_v19, %v2362_v40  ;;  %v2453_v40 = vld [vmem:[#allocation9 + $0x24] sm:$0xf0]  ;;  %v2454_v19 = vld [vmem:[#allocation9 + $0x34] sm:$0xf] }
 0x186   :  { %1684 = vmatpush.xpose.msrb.mxu3 %v3706_v39 }
 0x187   :  { %1635 = vmatpush.xpose.msrb.mxu2 %v4282_v23  ;;  %v1765_v0 = vmul.f32 %v1764_v28, %v1733_v57  ;;  %v2426_v28 = vld [vmem:[#allocation9 + $0xd0] sm:$0xf] }
 0x189   :  { %1522 = vmatpush.xpose.msrb.mxu0 %v3745_v54  ;;  %1564 = vmatpush.xpose.msrb.mxu1 %v3697_v48  ;;  %v1767_v2 = vsel %vm1766_vm3, %v1733_v57, %v1765_v0  ;;  %v2378_v48 = vld [vmem:[#allocation9 + $0x70] sm:$0xf]  ;;  %v2478_v54 = vld [vmem:[#allocation9 + $0xf4] sm:$0xf]  ;;  %v2380_v57 = vld [vmem:[#allocation9 + $0x78] sm:$0xf0]  ;;  %v3970_v0 = vor.u32 %v2474_v42, %v2428_v21 }
 0x18a   :  { %1686 = vmatpush.xpose.msrb.mxu3 %v3731_v9  ;;  %v1770_v32 = vsel %vm1768_vm4, %v1769_v38, %v1767_v2  ;;  %v3915_v22 = vor.u32 %v2463_v25, %v2378_v48  ;;  %v3917_v10 = vor.u32 %v2478_v54, %v2444_v36  ;;  %v3936_v6 = vor.u32 %v2462_v63, %v2380_v57  ;;  %v2457_v2 = vld [vmem:[#allocation9 + $0x44] sm:$0xf0]  ;;  %v2458_v48 = vld [vmem:[#allocation9 + $0x54] sm:$0xf]  ;;  %v2364_v25 = vld [vmem:[#allocation9 + $0x58] sm:$0xf0] }
 0x18b   :  { %1639 = vmatpush.xpose.msrb.mxu2 %v4283_v62  ;;  %v1785_v5 = vmul.f32 0.2236068, %v1770_v32  ;;  %v2475_v62 = vld [vmem:[#allocation9 + $0xd4] sm:$0xf0]  ;;  %v4293_v32 = vld [vmem:[#allocation27_spill] sm:$0xff] }
 0x18c   :  { %v3972_v38 = vor.u32 %v2475_v62, %v2426_v28  ;;  %v2472_v54 = vld [vmem:[#allocation9 + $0xc4] sm:$0xf]  ;;  %v2420_v36 = vld [vmem:[#allocation9 + $0xc8] sm:$0xf0]  ;;  %v2470_v63 = vld [vmem:[#allocation9 + $0xb4] sm:$0xf] }
 0x18d   :  { %1525 = vmatpush.xpose.msrb.mxu0 %v3762_v51  ;;  %1566 = vmatpush.xpose.msrb.mxu1 %v3706_v39  ;;  %v2032_v39 = vmul.f32 1.442695, %v2028_v3  ;;  %v2030_v13 = vsub.f32 0.0, %v1785_v5  ;;  %v4284_v51 = vand.u32 4294901760, %v3779_v27  ;;  %v2042_v52 = vadd.f32 1.0, %v1785_v5 }
 0x18e   :  { %1688 = vmatpush.xpose.msrb.mxu3 %v3748_v24  ;;  %v2354_v3 = vld [vmem:[#allocation9 + $0x40] sm:$0xf]  ;;  %v3981_v5 = vor.u32 %v2458_v48, %v2364_v25  ;;  %v2412_v57 = vld [vmem:[#allocation9 + $0xb8] sm:$0xf0]  ;;  %v2469_v28 = vld [vmem:[#allocation9 + $0xa4] sm:$0xf0] }
 0x18f   :  { %1643 = vmatpush.xpose.msrb.mxu2 %v1459_v17  ;;  %v3923_v17 = vor.u32 %v2479_v15, %v2442_v55  ;;  %2500 = vpow2.f32 %v2032_v39  ;;  %v2418_v39 = vld [vmem:[#allocation9 + $0xc0] sm:$0xf]  ;;  %v2473_v55 = vld [vmem:[#allocation9 + $0xc4] sm:$0xf0]  ;;  %v3983_v15 = vor.u32 %v2472_v54, %v2420_v36  ;;  %v2451_v48 = vld [vmem:[#allocation9 + $0x14] sm:$0xf0] }
 0x190   :  { %v2402_v21 = vld [vmem:[#allocation9 + $0xa0] sm:$0xf]  ;;  %v2452_v25 = vld [vmem:[#allocation9 + $0x24] sm:$0xf]  ;;  %v2466_v54 = vld [vmem:[#allocation9 + $0x94] sm:$0xf] }
 0x191   :  { %1528 = vmatpush.xpose.msrb.mxu0 %v3779_v27  ;;  %1568 = vmatpush.xpose.msrb.mxu1 %v3731_v9  ;;  %v2036_v9 = vmul.f32 1.442695, %v2030_v13  ;;  %v4285_v27 = vld [vmem:[#allocation22_spill] sm:$0xff]  ;;  %v3985_v13 = vor.u32 %v2473_v55, %v2418_v39  ;;  %v2396_v36 = vld [vmem:[#allocation9 + $0x98] sm:$0xf0] }
 0x192   :  { %1690 = vmatpush.xpose.msrb.mxu3 %v3765_v30 }
 0x193   :  { %1647 = vmatpush.xpose.msrb.mxu2 %v4284_v51  ;;  %2502 = vpow2.f32 %v2036_v9  ;;  %v2346_v51 = vld [vmem:[#allocation9 + $0x30] sm:$0xf]  ;;  %v2455_v9 = vld [vmem:[#allocation9 + $0x34] sm:$0xf0] }
 0x195   :  { %1531 = vmatpush.xpose.msrb.mxu0 %v3794_v53  ;;  %1570 = vmatpush.xpose.msrb.mxu1 %v3748_v24  ;;  %v2476_v24 = vld [vmem:[#allocation9 + $0xe4] sm:$0xf]  ;;  %v3938_v47 = vpop.eup %2500 }
 0x196   :  { %1692 = vmatpush.xpose.msrb.mxu3 %v3782_v26  ;;  %4286 = vst [vmem:[#allocation20_spill] sm:$0xff] %v3938_v47  ;;  %v3941_v53 = vor.u32 %v2476_v24, %v2436_v7  ;;  %v3993_v24 = vor.u32 %v2456_v29, %v2356_v35  ;;  %v2410_v7 = vld [vmem:[#allocation9 + $0xb0] sm:$0xf]  ;;  %v4019_v29 = vor.u32 %v2466_v54, %v2396_v36  ;;  %v2448_v54 = vld [vmem:[#allocation9 + $0x4] sm:$0xf] }
 0x197   :  { %1651 = vmatpush.xpose.msrb.mxu2 %v1471_v34  ;;  %v2040_v34 = vadd.f32 1.0, %v1783_v18  ;;  %v3967_v18 = vor.u32 %v2460_v59, %v2372_v8  ;;  %v2348_v59 = vld [vmem:[#allocation9 + $0x38] sm:$0xf0]  ;;  %v2468_v8 = vld [vmem:[#allocation9 + $0xa4] sm:$0xf] }
 0x198   :  { %1534 = vmatmul.f32.vlgmr.msrb.gmra.mxu0 %v4285_v27  ;;  %v3991_v27 = vor.u32 %v2455_v9, %v2346_v51  ;;  %v4005_v42 = vor.u32 %v2454_v19, %v2348_v59  ;;  %v2394_v51 = vld [vmem:[#allocation9 + $0x90] sm:$0xf]  ;;  %v2467_v9 = vld [vmem:[#allocation9 + $0x94] sm:$0xf0]  ;;  %4295 = vst [vmem:[#allocation22_spill] sm:$0xff] %v4019_v29 }
 0x199   :  { %1959 = vmatpush.bf16.xpose.msra.mxu0 %v3915_v22  ;;  %1572 = vmatpush.xpose.msrb.mxu1 %v3765_v30  ;;  %v3943_v49 = vpop.eup %2502  ;;  %v3946_v30 = vor.u32 %v2477_v33, %v2434_v20  ;;  %v3951_v12 = vmul.f32 %v3938_v47, %v2040_v34  ;;  %v2471_v20 = vld [vmem:[#allocation9 + $0xb4] sm:$0xf0]  ;;  %v3995_v33 = vor.u32 %v2470_v63, %v2412_v57  ;;  %v2322_v63 = vld [vmem:[#allocation9] sm:$0xf]  ;;  %v2449_v57 = vld [vmem:[#allocation9 + $0x4] sm:$0xf0] }
 0x19a   :  { %2001 = vmatpush.bf16.xpose.msra.mxu3 %v3917_v10  ;;  %1653 = vmatmul.f32.vlgmr.msrb.gmra.mxu2 %v4268_v4  ;;  %4287 = vst [vmem:[#allocation29_spill] sm:$0xff] %v3943_v49  ;;  %v3997_v34 = vor.u32 %v2471_v20, %v2410_v7  ;;  %v4021_v35 = vor.u32 %v2467_v9, %v2394_v51  ;;  %v2450_v7 = vld [vmem:[#allocation9 + $0x14] sm:$0xf]  ;;  %v2332_v20 = vld [vmem:[#allocation9 + $0x18] sm:$0xf0] }
 0x19b   :  { %1987 = vmatpush.bf16.xpose.msra.mxu2 %v3923_v17  ;;  %1694 = vmatmul.f32.vlgmr.msrb.gmra.mxu3 %v4268_v4  ;;  %4288 = vst [vmem:[#allocation21_spill] sm:$0xff] %v3951_v12  ;;  %v3954_v4 = vmul.f32 %v3943_v49, %v2042_v52  ;;  %v2338_v52 = vld [vmem:[#allocation9 + $0x20] sm:$0xf]  ;;  %v4027_v19 = vor.u32 %v2449_v57, %v2322_v63  ;;  %v2324_v36 = vld [vmem:[#allocation9 + $0x8] sm:$0xf0]  ;;  %v996_v57 = vpop.f32.mrf.mxu0 }
 0x19c   :  { %4296 = vst [vmem:[#allocation26_spill] sm:$0xff] %v4021_v35  ;;  %v4029_v59 = vor.u32 %v2450_v7, %v2332_v20  ;;  %v4039_v63 = vor.u32 %v2448_v54, %v2324_v36 }
 0x19d   :  { %1574 = vmatpush.xpose.msrb.mxu1 %v3782_v26  ;;  %4289 = vst [vmem:[#allocation24_spill] sm:$0xff] %v3954_v4  ;;  %v4291_v26 = vld [vmem:[#allocation23_spill] sm:$0xff]  ;;  %v3961_v23 = vpack.c.bf16 %v3954_v4, %v3951_v12  ;;  %v1105_v7 = vpop.f32.mrf.mxu1  ;;  %v1163_v20 = vpop.f32.mrf.mxu2 }
 0x19e   :  { %4297 = vst [vmem:[#allocation23_spill] sm:$0xff] %v4027_v19 }
 0x19f   :  { %4292 = vst [vmem:[#allocation28_spill] sm:$0xff] %v3961_v23 }
 0x1a0   :  { %1539 = vmatmul.f32.gmra.mxu0 %v4290_v14  ;;  %1578 = vmatmul.f32.vlgmr.msrb.gmra.mxu1 %v4291_v26  ;;  %v2404_v14 = vld [vmem:[#allocation9 + $0xa8] sm:$0xf0]  ;;  %v4003_v26 = vor.u32 %v2453_v40, %v2338_v52  ;;  %v2464_v52 = vld [vmem:[#allocation9 + $0x84] sm:$0xf]  ;;  %4298 = vst [vmem:[#allocation27_spill] sm:$0xff] %v4029_v59 }
 0x1a1   :  { %1960 = vmatpush.bf16.xpose.msra.mxu0 %v3934_v50  ;;  %1973 = vmatpush.bf16.xpose.msra.mxu1 %v3936_v6  ;;  %v4007_v62 = vor.u32 %v2468_v8, %v2404_v14  ;;  %v2388_v40 = vld [vmem:[#allocation9 + $0x88] sm:$0xf0]  ;;  %v2386_v8 = vld [vmem:[#allocation9 + $0x80] sm:$0xf]  ;;  %v2465_v14 = vld [vmem:[#allocation9 + $0x84] sm:$0xf0] }
 0x1a2   :  { %2002 = vmatpush.bf16.xpose.msra.mxu3 %v3941_v53  ;;  %1657 = vmatmul.f32.gmra.mxu2 %v4273_v37  ;;  %4301 = vst [vmem:[#allocation32_spill] sm:$0xff] %v4039_v63 }
 0x1a3   :  { %1988 = vmatpush.bf16.xpose.msra.mxu2 %v3946_v30  ;;  %1698 = vmatmul.f32.gmra.mxu3 %v4273_v37  ;;  %v3979_v37 = vor.u32 %v2457_v2, %v2354_v3  ;;  %v4009_v3 = vor.u32 %v2469_v28, %v2402_v21  ;;  %v2330_v2 = vld [vmem:[#allocation9 + $0x10] sm:$0xf]  ;;  %v4031_v21 = vor.u32 %v2464_v52, %v2388_v40  ;;  %v1207_v52 = vpop.f32.mrf.mxu3  ;;  %v1004_v40 = vpop.f32.mrf.mxu0 }
 0x1a4   :  { %v4015_v39 = vor.u32 %v2451_v48, %v2330_v2  ;;  %v4033_v28 = vor.u32 %v2465_v14, %v2386_v8  ;;  %v2314_v2 = vld [vmem:[#allocation3] sm:$0xf]  ;;  %v2481_v48 = vld [vmem:[#allocation3 + $0x4] sm:$0xf0]  ;;  %v1106_v14 = vadd.f32 %v1105_v7, %v996_v57 }
 0x1a5   :  { %4299 = vst [vmem:[#allocation30_spill] sm:$0xff] %v4031_v21  ;;  %v2315_v51 = vor.u32 %v2481_v48, %v2314_v2  ;;  %v1109_v8 = vpop.f32.mrf.mxu1  ;;  %v1168_v23 = vpop.f32.mrf.mxu2 }
 0x1a6   :  { %4294 = vst [vmem:[#allocation25_spill] sm:$0xff] %v4015_v39  ;;  %v1164_v2 = vadd.f32 %v1163_v20, %v1106_v14  ;;  %v1110_v48 = vadd.f32 %v1109_v8, %v1004_v40  ;;  %v2514_v40 = vld [vmem:[#allocation7 + $0x1f0] sm:$0xff]  ;;  %v2516_v8 = vld [vmem:[#allocation7 + $0xf8] sm:$0xff]  ;;  %v2517_v14 = vld [vmem:[#allocation7 + $0xe8] sm:$0xff] }
 0x1a7   :  { %4300 = vst [vmem:[#allocation31_spill] sm:$0xff] %v4033_v28 }
 0x1a8   :  { %1584 = vmatmul.f32.gmra.mxu1 %v4293_v32  ;;  %v2340_v32 = vld [vmem:[#allocation9 + $0x28] sm:$0xf0] }
 0x1a9   :  { %1961 = vmatpush.bf16.xpose.msra.mxu0 %v3965_v41  ;;  %1974 = vmatpush.bf16.xpose.msra.mxu1 %v3967_v18  ;;  %v4017_v55 = vor.u32 %v2452_v25, %v2340_v32  ;;  %v2480_v25 = vld [vmem:[#allocation3 + $0x4] sm:$0xf]  ;;  %v2316_v32 = vld [vmem:[#allocation3 + $0x8] sm:$0xf0] }
 0x1aa   :  { %2003 = vmatpush.bf16.xpose.msra.mxu3 %v3970_v0  ;;  %v2319_v9 = vor.u32 %v2480_v25, %v2316_v32  ;;  %v1208_v25 = vadd.f32 %v1207_v52, %v1164_v2  ;;  %v1169_v32 = vadd.f32 %v1168_v23, %v1110_v48  ;;  %v2515_v52 = vld [vmem:[#allocation7 + $0x1e0] sm:$0xff]  ;;  %v2073_v2 = vpack.c.bf16 %v2516_v8, %v2517_v14  ;;  %v2518_v48 = vld [vmem:[#allocation7 + $0x1f8] sm:$0xff] }
 0x1ab   :  { %1989 = vmatpush.bf16.xpose.msra.mxu2 %v3972_v38  ;;  %v1213_v4 = vpop.f32.mrf.mxu3  ;;  %v2088_v23 = vpack.c.bf16 %v2514_v40, %v2515_v52  ;;  %v2526_v40 = vld [vmem:[#allocation7 + $0x1d8] sm:$0xff]  ;;  %v2527_v52 = vld [vmem:[#allocation7 + $0x1c8] sm:$0xff] }
 0x1ac   :  { %v2087_v8 = vpack.c.bf16 %v2526_v40, %v2527_v52  ;;  %v2538_v52 = vld [vmem:[#allocation7 + $0x190] sm:$0xff] }
 0x1b1   :  { %1962 = vmatpush.bf16.xpose.msra.mxu0 %v3979_v37  ;;  %1975 = vmatpush.bf16.xpose.msra.mxu1 %v3981_v5 }
 0x1b2   :  { %2004 = vmatpush.bf16.xpose.msra.mxu3 %v3983_v15 }
 0x1b3   :  { %1990 = vmatpush.bf16.xpose.msra.mxu2 %v3985_v13 }
 0x1b9   :  { %1963 = vmatpush.bf16.xpose.msra.mxu0 %v3991_v27  ;;  %1976 = vmatpush.bf16.xpose.msra.mxu1 %v3993_v24 }
 0x1ba   :  { %2005 = vmatpush.bf16.xpose.msra.mxu3 %v3995_v33 }
 0x1bb   :  { %1991 = vmatpush.bf16.xpose.msra.mxu2 %v3997_v34 }
 0x1c1   :  { %1964 = vmatpush.bf16.xpose.msra.mxu0 %v4003_v26  ;;  %1977 = vmatpush.bf16.xpose.msra.mxu1 %v4005_v42 }
 0x1c2   :  { %2006 = vmatpush.bf16.xpose.msra.mxu3 %v4007_v62 }
 0x1c3   :  { %1992 = vmatpush.bf16.xpose.msra.mxu2 %v4009_v3 }
 0x1c9   :  { %1965 = vmatpush.bf16.xpose.msra.mxu0 %v4015_v39  ;;  %1978 = vmatpush.bf16.xpose.msra.mxu1 %v4017_v55  ;;  %v2513_v39 = vld [vmem:[#allocation7 + $0xe0] sm:$0xff] }
 0x1ca   :  { %2007 = vmatpush.bf16.xpose.msra.mxu3 %v4019_v29 }
 0x1cb   :  { %1993 = vmatpush.bf16.xpose.msra.mxu2 %v4021_v35  ;;  %v2512_v35 = vld [vmem:[#allocation7 + $0xf0] sm:$0xff] }
 0x1cc   :  { %v2072_v20 = vpack.c.bf16 %v2512_v35, %v2513_v39  ;;  %v2524_v35 = vld [vmem:[#allocation7 + $0xd8] sm:$0xff] }
 0x1d1   :  { %1966 = vmatpush.bf16.xpose.msra.mxu0 %v4027_v19  ;;  %1979 = vmatpush.bf16.xpose.msra.mxu1 %v4029_v59 }
 0x1d2   :  { %2008 = vmatpush.bf16.xpose.msra.mxu3 %v4031_v21 }
 0x1d3   :  { %1994 = vmatpush.bf16.xpose.msra.mxu2 %v4033_v28 }
 0x1d5   :  { %v1282_v49 = vpop.f32.mrf.mxu0 }
 0x1d8   :  { %1967 = vmatmul.bf16.vlgmr.msra.gmra.mxu0 %v2315_v51 }
 0x1d9   :  { %2009 = vmatmul.bf16.vlgmr.msra.gmra.mxu3 %v2319_v9  ;;  %1980 = vmatpush.bf16.xpose.msra.mxu1 %v4039_v63 }
 0x1da   :  { %1995 = vmatmul.bf16.vlgmr.msra.gmra.mxu2 %v2315_v51  ;;  %v1283_v51 = vadd.f32 %v1282_v49, %v1208_v25  ;;  %v2519_v49 = vld [vmem:[#allocation7 + $0x1e8] sm:$0xff]  ;;  %2092 = vmatpush.bf16.msrb.mxu0 %v2072_v20 }
 0x1db   :  { %2120 = vmatpush.bf16.msrb.mxu2 %v2073_v2  ;;  %v2530_v2 = vld [vmem:[#allocation7 + $0x1b0] sm:$0xff] }
 0x1dd   :  { %v1323_v54 = vpop.f32.mrf.mxu1  ;;  %v1368_v36 = vpop.f32.mrf.mxu2 }
 0x1de   :  { %v1477_v12 = vpop.f32.mrf.mxu3  ;;  %v1286_v47 = vpop.f32.mrf.mxu0  ;;  %v1324_v21 = vadd.f32 %v1323_v54, %v1283_v51  ;;  %v2523_v54 = vld [vmem:[#allocation7 + $0x1c0] sm:$0xff]  ;;  %v2525_v51 = vld [vmem:[#allocation7 + $0xc8] sm:$0xff] }
 0x1e0   :  { %1981 = vmatmul.bf16.vlgmr.msra.gmra.mxu1 %v2319_v9  ;;  %v1214_v9 = vadd.f32 %v1213_v4, %v1169_v32  ;;  %v1369_v59 = vadd.f32 %v1368_v36, %v1324_v21  ;;  %v2089_v4 = vpack.c.bf16 %v2518_v48, %v2519_v49  ;;  %v2520_v32 = vld [vmem:[#allocation7 + $0xd0] sm:$0xff]  ;;  %v2521_v21 = vld [vmem:[#allocation7 + $0xc0] sm:$0xff] }
 0x1e1   :  { %2106 = vmatpush.bf16.msrb.mxu1 %v2088_v23  ;;  %v2528_v23 = vld [vmem:[#allocation7 + $0xb0] sm:$0xff]  ;;  %v2529_v48 = vld [vmem:[#allocation7 + $0xa0] sm:$0xff] }
 0x1e2   :  { %v1287_v63 = vadd.f32 %v1286_v47, %v1214_v9  ;;  %v1478_v25 = vadd.f32 %v1477_v12, %v1369_v59  ;;  %2134 = vmatpush.bf16.msrb.mxu3 %v2089_v4  ;;  %v2071_v9 = vpack.c.bf16 %v2524_v35, %v2525_v51  ;;  %v1716_v12 = vperm.slane %v3845_v43, 1  ;;  %v2531_v49 = vld [vmem:[#allocation7 + $0x1a0] sm:$0xff]  ;;  %v2535_v35 = vld [vmem:[#allocation7 + $0x1a8] sm:$0xff] }
 0x1e3   :  { %v2084_v4 = vpack.c.bf16 %v2530_v2, %v2531_v49  ;;  %v2542_v2 = vld [vmem:[#allocation7 + $0x198] sm:$0xff] }
 0x1e4   :  { %2121 = vmatpush.bf16.msrb.mxu2 %v2071_v9  ;;  %v2539_v9 = vld [vmem:[#allocation7 + $0x180] sm:$0xff]  ;;  %v2083_v49 = vpack.c.bf16 %v2542_v2, %v3627_v16  ;;  %v2548_v16 = vld [vmem:[#allocation7 + $0x68] sm:$0xff] }
 0x1e5   :  { %v1327_v28 = vpop.f32.mrf.mxu1  ;;  %v1376_v19 = vpop.f32.mrf.mxu2 }
 0x1e6   :  { %v1481_v29 = vpop.f32.mrf.mxu3  ;;  %v1328_v57 = vadd.f32 %v1327_v28, %v1287_v63  ;;  %v2070_v28 = vpack.c.bf16 %v2520_v32, %v2521_v21  ;;  %v2522_v63 = vld [vmem:[#allocation7 + $0x1d0] sm:$0xff]  ;;  %2135 = vmatpush.bf16.msrb.mxu3 %v2087_v8  ;;  %v2532_v32 = vld [vmem:[#allocation7 + $0xb8] sm:$0xff]  ;;  %v2533_v21 = vld [vmem:[#allocation7 + $0xa8] sm:$0xff]  ;;  %v2082_v8 = vpack.c.bf16 %v2538_v52, %v2539_v9 }
 0x1e7   :  { %v2086_v36 = vpack.c.bf16 %v2522_v63, %v2523_v54  ;;  %v2069_v63 = vpack.c.bf16 %v2532_v32, %v2533_v21  ;;  %v2534_v54 = vld [vmem:[#allocation7 + $0x1b8] sm:$0xff]  ;;  %v2543_v32 = vld [vmem:[#allocation7 + $0x70] sm:$0xff]  ;;  %v2544_v21 = vld [vmem:[#allocation7 + $0x60] sm:$0xff] }
 0x1e8   :  { %v1377_v47 = vadd.f32 %v1376_v19, %v1328_v57  ;;  %2093 = vmatpush.bf16.msrb.mxu0 %v2070_v28  ;;  %v2536_v28 = vld [vmem:[#allocation7 + $0x90] sm:$0xff] }
 0x1e9   :  { %2107 = vmatpush.bf16.msrb.mxu1 %v2086_v36  ;;  %v2537_v36 = vld [vmem:[#allocation7 + $0x80] sm:$0xff]  ;;  %2122 = vmatpush.bf16.msrb.mxu2 %v2069_v63 }
 0x1ea   :  { %v1482_v20 = vadd.f32 %v1481_v29, %v1377_v47  ;;  %v1720_v29 = vadd.f32 %v1716_v12, %v3849_v11  ;;  %v2066_v40 = vpack.c.bf16 %v2536_v28, %v2537_v36  ;;  %v1722_v36 = vadd.f32 %v1716_v12, %v3869_v58  ;;  %v2551_v58 = vld [vmem:[#allocation7 + $0x150] sm:$0xff]  ;;  %v2552_v12 = vld [vmem:[#allocation7 + $0x140] sm:$0xff] }
 0x1ed   :  { %2108 = vmatpush.bf16.msrb.mxu1 %v2084_v4 }
 0x1f1   :  { %2109 = vmatpush.bf16.msrb.mxu1 %v2082_v8 }
 0x215   :  { %v1535_v7 = vpop.f32.mrf.mxu0 }
 0x216   :  { %v1536_v39 = vadd.f32 %v1535_v7, %v1478_v25  ;;  %v2068_v7 = vpack.c.bf16 %v2528_v23, %v2529_v48  ;;  %v2541_v23 = vld [vmem:[#allocation7 + $0x88] sm:$0xff] }
 0x218   :  { %2094 = vmatpush.bf16.msrb.mxu0 %v2068_v7 }
 0x21c   :  { %2095 = vmatpush.bf16.msrb.mxu0 %v2066_v40 }
 0x21d   :  { %v1579_v14 = vpop.f32.mrf.mxu1  ;;  %v1654_v59 = vpop.f32.mrf.mxu2 }
 0x21e   :  { %v1580_v19 = vadd.f32 %v1579_v14, %v1536_v39  ;;  %v1695_v57 = vpop.f32.mrf.mxu3  ;;  %v2085_v39 = vpack.c.bf16 %v2534_v54, %v2535_v35  ;;  %v1540_v51 = vpop.f32.mrf.mxu0  ;;  %v2064_v54 = vpack.c.bf16 %v2543_v32, %v2544_v21  ;;  %v2546_v35 = vld [vmem:[#allocation7 + $0x160] sm:$0xff]  ;;  %v2557_v21 = vld [vmem:[#allocation7 + $0x130] sm:$0xff] }
 0x21f   :  { %v1541_v14 = vadd.f32 %v1540_v51, %v1482_v20  ;;  %v2545_v20 = vld [vmem:[#allocation7 + $0x170] sm:$0xff] }
 0x220   :  { %v1655_v25 = vadd.f32 %v1654_v59, %v1580_v19  ;;  %2136 = vmatpush.bf16.msrb.mxu3 %v2085_v39  ;;  %v2540_v59 = vld [vmem:[#allocation7 + $0x98] sm:$0xff]  ;;  %v2080_v63 = vpack.c.bf16 %v2545_v20, %v2546_v35  ;;  %2096 = vmatpush.bf16.msrb.mxu0 %v2064_v54  ;;  %v2558_v54 = vld [vmem:[#allocation7 + $0x120] sm:$0xff] }
 0x221   :  { %v2067_v48 = vpack.c.bf16 %v2540_v59, %v2541_v23  ;;  %v2078_v59 = vpack.c.bf16 %v2551_v58, %v2552_v12  ;;  %v2553_v23 = vld [vmem:[#allocation7 + $0x58] sm:$0xff]  ;;  %v2076_v20 = vpack.c.bf16 %v2557_v21, %v2558_v54 }
 0x222   :  { %v1696_v47 = vadd.f32 %v1695_v57, %v1655_v25  ;;  %2110 = vmatpush.bf16.msrb.mxu1 %v2080_v63  ;;  %v2559_v35 = vld [vmem:[#allocation7 + $0x38] sm:$0xff]  ;;  %v2560_v63 = vld [vmem:[#allocation7 + $0x28] sm:$0xff] }
 0x223   :  { %2123 = vmatpush.bf16.msrb.mxu2 %v2067_v48  ;;  %v2554_v48 = vld [vmem:[#allocation7 + $0x48] sm:$0xff]  ;;  %v4311_v21 = vld [vmem:[#allocation21_spill] sm:$0xff] }
 0x224   :  { %v1724_v19 = vmul.f32 2.0, %v1696_v47  ;;  %2137 = vmatpush.bf16.msrb.mxu3 %v2083_v49  ;;  %v2547_v47 = vld [vmem:[#allocation7 + $0x78] sm:$0xff]  ;;  %v2063_v2 = vpack.c.bf16 %v2553_v23, %v2554_v48  ;;  %v2079_v49 = vpack.c.bf16 %v3681_v61, %v3699_v1 }
 0x225   :  { %v1585_v11 = vpop.f32.mrf.mxu1  ;;  %v1658_v4 = vpop.f32.mrf.mxu2  ;;  %v2065_v28 = vpack.c.bf16 %v2547_v47, %v2548_v16  ;;  %v2077_v47 = vpack.c.bf16 %v3716_v31, %v3733_v46  ;;  %v2075_v46 = vpack.c.bf16 %v3750_v60, %v3767_v44  ;;  %v4308_v48 = vld [vmem:[#allocation32_spill] sm:$0xff] }
 0x226   :  { %v1728_v57 = vsub.f32 %v1720_v29, %v1724_v19  ;;  %v1586_v7 = vadd.f32 %v1585_v11, %v1541_v14  ;;  %v1699_v25 = vpop.f32.mrf.mxu3  ;;  %v2081_v29 = vpack.c.bf16 %v3643_v56, %v3663_v45  ;;  %v2549_v56 = vld [vmem:[#allocation7 + $0x50] sm:$0xff]  ;;  %v2550_v45 = vld [vmem:[#allocation7 + $0x40] sm:$0xff]  ;;  %2111 = vmatpush.bf16.msrb.mxu1 %v2078_v59 }
 0x227   :  { %2124 = vmatpush.bf16.msrb.mxu2 %v2065_v28  ;;  %v2062_v43 = vpack.c.bf16 %v2549_v56, %v2550_v45  ;;  %v2561_v28 = vld [vmem:[#allocation7 + $0x10] sm:$0xff]  ;;  %v2566_v56 = vld [vmem:[#allocation7 + $0x8] sm:$0xff] }
 0x228   :  { %v4047_v39 = vmax.f32 %v1728_v57, 0.0  ;;  %v1659_v51 = vadd.f32 %v1658_v4, %v1586_v7  ;;  %2138 = vmatpush.bf16.msrb.mxu3 %v2081_v29  ;;  %v2555_v4 = vld [vmem:[#allocation7 + $0x30] sm:$0xff]  ;;  %v2562_v29 = vld [vmem:[#allocation7] sm:$0xff] }
 0x229   :  { %2097 = vmatpush.bf16.msrb.mxu0 %v2062_v43 }
 0x22a   :  { %2504 = vrsqrt.f32 %v4047_v39  ;;  %v1700_v40 = vadd.f32 %v1699_v25, %v1659_v51  ;;  %v2556_v25 = vld [vmem:[#allocation7 + $0x20] sm:$0xff]  ;;  %v2061_v51 = vpack.c.bf16 %v2559_v35, %v2560_v63  ;;  %2112 = vmatpush.bf16.msrb.mxu1 %v2076_v20  ;;  %vm1754_vm5 = vcmp.eq.f32.partialorder %v4047_v39, inf }
 0x22b   :  { %2125 = vmatpush.bf16.msrb.mxu2 %v2063_v2  ;;  %v2060_v32 = vpack.c.bf16 %v2555_v4, %v2556_v25  ;;  %vm1756_vm6 = vcmp.eq.f32.partialorder %v4047_v39, 0.0  ;;  %v4309_v2 = vld [vmem:[#allocation30_spill] sm:$0xff]  ;;  %v4310_v25 = vld [vmem:[#allocation20_spill] sm:$0xff] }
 0x22c   :  { %v1726_v52 = vmul.f32 2.0, %v1700_v40  ;;  %2139 = vmatpush.bf16.msrb.mxu3 %v2079_v49  ;;  %v2563_v40 = vld [vmem:[#allocation7 + $0x110] sm:$0xff] }
 0x22d   :  { %2098 = vmatpush.bf16.msrb.mxu0 %v2060_v32 }
 0x22e   :  { %v1730_v9 = vsub.f32 %v1722_v36, %v1726_v52  ;;  %v2058_v36 = vpack.c.bf16 %v2561_v28, %v2562_v29  ;;  %v2564_v52 = vld [vmem:[#allocation7 + $0x100] sm:$0xff] }
 0x22f   :  { %2126 = vmatpush.bf16.msrb.mxu2 %v2061_v51 }
 0x230   :  { %v2505_v8 = vpop.eup %2504  ;;  %v4055_v14 = vmax.f32 %v1730_v9, 0.0  ;;  %2140 = vmatpush.bf16.msrb.mxu3 %v2077_v47  ;;  %v2074_v9 = vpack.c.bf16 %v2563_v40, %v2564_v52 }
 0x231   :  { %v1748_v19 = vmul.f32 %v2505_v8, %v4047_v39  ;;  %2099 = vmatpush.bf16.msrb.mxu0 %v2058_v36 }
 0x232   :  { %2506 = vrsqrt.f32 %v4055_v14  ;;  %2113 = vmatpush.bf16.msrb.mxu1 %v2074_v9  ;;  %vm1778_vm7 = vcmp.eq.f32.partialorder %v4055_v14, inf  ;;  %vm1780_vm8 = vcmp.eq.f32.partialorder %v4055_v14, 0.0 }
 0x233   :  { %v1749_v11 = vmul.f32 %v2505_v8, %v1748_v19  ;;  %v2565_v19 = vld [vmem:[#allocation7 + $0x18] sm:$0xff] }
 0x234   :  { %v2059_v45 = vpack.c.bf16 %v2565_v19, %v2566_v56  ;;  %2141 = vmatpush.bf16.msrb.mxu3 %v2075_v46  ;;  %v4312_v46 = vld [vmem:[#allocation29_spill] sm:$0xff] }
 0x235   :  { %v1750_v57 = vmul.f32 0.5, %v1749_v11  ;;  %2150 = vmatpush.bf16.msra.mxu0 %v3915_v22  ;;  %v1757_v22 = vand.u32 2147483648, %v4047_v39 }
 0x236   :  { %2127 = vmatpush.bf16.msrb.mxu2 %v2059_v45  ;;  %2164 = vmatpush.bf16.msra.mxu1 %v3923_v17 }
 0x237   :  { %v1751_v61 = vsub.f32 1.5, %v1750_v57 }
 0x238   :  { %v2507_v7 = vpop.eup %2506  ;;  %2192 = vmatpush.bf16.msra.mxu3 %v3917_v10 }
 0x239   :  { %v1772_v1 = vmul.f32 %v2507_v7, %v4055_v14  ;;  %v1752_v43 = vmul.f32 %v2505_v8, %v1751_v61  ;;  %2151 = vmatpush.bf16.msra.mxu0 %v3934_v50  ;;  %v4306_v8 = vld [vmem:[#allocation23_spill] sm:$0xff] }
 0x23a   :  { %2178 = vmatpush.bf16.msra.mxu2 %v3936_v6  ;;  %2165 = vmatpush.bf16.msra.mxu1 %v3946_v30 }
 0x23b   :  { %v1773_v16 = vmul.f32 %v2507_v7, %v1772_v1  ;;  %v1753_v12 = vmul.f32 %v1752_v43, %v4047_v39  ;;  %v4313_v43 = vld [vmem:[#allocation24_spill] sm:$0xff] }
 0x23c   :  { %2193 = vmatpush.bf16.msra.mxu3 %v3941_v53  ;;  %v1781_v53 = vand.u32 2147483648, %v4055_v14 }
 0x23d   :  { %v1774_v31 = vmul.f32 0.5, %v1773_v16  ;;  %v1755_v44 = vsel %vm1754_vm5, %v4047_v39, %v1753_v12  ;;  %2152 = vmatpush.bf16.msra.mxu0 %v3965_v41 }
 0x23e   :  { %2179 = vmatpush.bf16.msra.mxu2 %v3967_v18  ;;  %v1758_v10 = vsel %vm1756_vm6, %v1757_v22, %v1755_v44  ;;  %2166 = vmatpush.bf16.msra.mxu1 %v3972_v38  ;;  %v186_v38 = vld [vmem:[#allocation10] sm:$0x3] }
 0x23f   :  { %v1775_v58 = vsub.f32 1.5, %v1774_v31  ;;  %v1784_v50 = vmul.f32 0.2236068, %v1758_v10 }
 0x240   :  { %2194 = vmatpush.bf16.msra.mxu3 %v3970_v0 }
 0x241   :  { %v1776_v60 = vmul.f32 %v2507_v7, %v1775_v58  ;;  %2153 = vmatpush.bf16.msra.mxu0 %v3979_v37  ;;  %v2029_v30 = vsub.f32 0.0, %v1784_v50  ;;  %v2041_v11 = vadd.f32 1.0, %v1784_v50 }
 0x242   :  { %2180 = vmatpush.bf16.msra.mxu2 %v3981_v5  ;;  %2167 = vmatpush.bf16.msra.mxu1 %v3985_v13  ;;  %v4303_v13 = vld [vmem:[#allocation26_spill] sm:$0xff] }
 0x243   :  { %v1777_v17 = vmul.f32 %v1776_v60, %v4055_v14  ;;  %v2034_v0 = vmul.f32 1.442695, %v2029_v30 }
 0x244   :  { %2195 = vmatpush.bf16.msra.mxu3 %v3983_v15  ;;  %v4302_v15 = vld [vmem:[#allocation25_spill] sm:$0xff] }
 0x245   :  { %v1779_v6 = vsel %vm1778_vm7, %v4055_v14, %v1777_v17  ;;  %2154 = vmatpush.bf16.msra.mxu0 %v3991_v27  ;;  %2508 = vpow2.f32 %v2034_v0  ;;  %v4307_v14 = vld [vmem:[#allocation31_spill] sm:$0xff] }
 0x246   :  { %2181 = vmatpush.bf16.msra.mxu2 %v3993_v24  ;;  %v1782_v41 = vsel %vm1780_vm8, %v1781_v53, %v1779_v6  ;;  %2168 = vmatpush.bf16.msra.mxu1 %v3997_v34  ;;  %v2016_v24 = vperm.slane %v186_v38, 0  ;;  %v4305_v34 = vld [vmem:[#allocation22_spill] sm:$0xff]  ;;  %v4314_v6 = vld [vmem:[#allocation28_spill] sm:$0xff] }
 0x247   :  { %v1786_v18 = vmul.f32 0.2236068, %v1782_v41 }
 0x248   :  { %2196 = vmatpush.bf16.msra.mxu3 %v3995_v33  ;;  %v4304_v33 = vld [vmem:[#allocation27_spill] sm:$0xff] }
 0x249   :  { %2155 = vmatpush.bf16.msra.mxu0 %v4003_v26  ;;  %v2031_v37 = vsub.f32 0.0, %v1786_v18  ;;  %v2043_v9 = vadd.f32 1.0, %v1786_v18 }
 0x24a   :  { %2182 = vmatpush.bf16.msra.mxu2 %v4005_v42  ;;  %2169 = vmatpush.bf16.msra.mxu1 %v4009_v3  ;;  %v2017_v42 = vperm.slane %v186_v38, 1 }
 0x24b   :  { %v2038_v39 = vmul.f32 1.442695, %v2031_v37  ;;  %v2509_v59 = vpop.eup %2508 }
 0x24c   :  { %2197 = vmatpush.bf16.msra.mxu3 %v4007_v62  ;;  %v2045_v4 = vmul.f32 %v2509_v59, %v2041_v11 }
 0x24d   :  { %2156 = vmatpush.bf16.msra.mxu0 %v4302_v15  ;;  %2510 = vpow2.f32 %v2038_v39 }
 0x24e   :  { %2183 = vmatpush.bf16.msra.mxu2 %v4017_v55  ;;  %2170 = vmatpush.bf16.msra.mxu1 %v4303_v13 }
 0x250   :  { %2198 = vmatpush.bf16.msra.mxu3 %v4305_v34 }
 0x251   :  { %2157 = vmatpush.bf16.msra.mxu0 %v4306_v8 }
 0x252   :  { %2184 = vmatpush.bf16.msra.mxu2 %v4304_v33  ;;  %2171 = vmatpush.bf16.msra.mxu1 %v4307_v14 }
 0x253   :  { %v2511_v36 = vpop.eup %2510 }
 0x254   :  { %2199 = vmatpush.bf16.msra.mxu3 %v4309_v2  ;;  %v2047_v45 = vmul.f32 %v2511_v36, %v2043_v9 }
 0x255   :  { %v1968_v5 = vpop.f32.mrf.mxu0 }
 0x256   :  { %2185 = vmatpush.bf16.msra.mxu2 %v4308_v48  ;;  %v2149_v50 = vpack.c.bf16 %v2047_v45, %v2045_v4 }
 0x25c   :  { %v2010_v27 = vpop.f32.mrf.mxu3 }
 0x25d   :  { %v1982_v26 = vpop.f32.mrf.mxu1  ;;  %v1996_v55 = vpop.f32.mrf.mxu2 }
 0x25e   :  { %v1983_v3 = vadd.f32 %v1982_v26, %v1968_v5  ;;  %v2011_v62 = vadd.f32 %v2010_v27, %v1996_v55  ;;  %v1970_v20 = vpop.f32.mrf.mxu0  ;;  %v2567_v26 = vld [vmem:[#allocation4] sm:$0xff] }
 0x260   :  { %v2020_v23 = vsub.f32 %v1983_v3, %v2016_v24  ;;  %v2021_v49 = vsub.f32 %v2011_v62, %v2017_v42 }
 0x262   :  { %v2024_v57 = vmul.f32 0.2236068, %v2020_v23  ;;  %v2025_v7 = vmul.f32 0.2236068, %v2021_v49  ;;  %v2568_v23 = vld [vmem:[#allocation4 + $0x8] sm:$0xff] }
 0x264   :  { %v2048_v32 = vmul.f32 %v4310_v25, %v2024_v57  ;;  %v2236_v54 = vmul.f32 %v4311_v21, %v2024_v57  ;;  %v2049_v63 = vmul.f32 %v2509_v59, %v2025_v7  ;;  %v2237_v51 = vmul.f32 %v2045_v4, %v2025_v7  ;;  %v2012_v47 = vpop.f32.mrf.mxu3  ;;  %v2569_v57 = vld [vmem:[#allocation4 + $0x10] sm:$0xff] }
 0x265   :  { %v1984_v35 = vpop.f32.mrf.mxu1  ;;  %v1998_v61 = vpop.f32.mrf.mxu2 }
 0x266   :  { %v1985_v1 = vadd.f32 %v1984_v35, %v1970_v20  ;;  %v2013_v16 = vadd.f32 %v2012_v47, %v1998_v61  ;;  %v2052_v28 = vadd.f32 %v2049_v63, %v2048_v32  ;;  %v2240_v29 = vadd.f32 %v2237_v51, %v2236_v54  ;;  %v2570_v61 = vld [vmem:[#allocation4 + $0x18] sm:$0xff] }
 0x268   :  { %v2022_v40 = vsub.f32 %v1985_v1, %v2016_v24  ;;  %v2023_v52 = vsub.f32 %v2013_v16, %v2017_v42  ;;  %2053 = vadd.xlane.f32.xlu2 %v2052_v28  ;;  %2241 = vadd.xlane.f32.xlu0 %v2240_v29 }
 0x26a   :  { %v2026_v19 = vmul.f32 0.2236068, %v2022_v40  ;;  %v2027_v56 = vmul.f32 0.2236068, %v2023_v52 }
 0x26c   :  { %v2050_v31 = vmul.f32 %v4312_v46, %v2026_v19  ;;  %v2238_v58 = vmul.f32 %v4313_v43, %v2026_v19  ;;  %v2051_v12 = vmul.f32 %v2511_v36, %v2027_v56  ;;  %v2239_v60 = vmul.f32 %v2047_v45, %v2027_v56 }
 0x26e   :  { %v2090_v44 = vpack.c.bf16 %v2050_v31, %v2048_v32  ;;  %v2091_v22 = vpack.c.bf16 %v2051_v12, %v2049_v63  ;;  %v2055_v10 = vadd.f32 %v2051_v12, %v2050_v31  ;;  %v2243_v17 = vadd.f32 %v2239_v60, %v2238_v58 }
 0x270   :  { %2100 = vmatmul.bf16.vlgmr.msrb.gmra.mxu0 %v2090_v44  ;;  %2128 = vmatmul.bf16.vlgmr.msrb.gmra.mxu2 %v2090_v44 }
 0x271   :  { %2114 = vmatmul.bf16.vlgmr.msrb.gmra.mxu1 %v2091_v22  ;;  %2142 = vmatmul.bf16.vlgmr.msrb.gmra.mxu3 %v2091_v22 }
 0x272   :  { %2056 = vadd.xlane.f32.xlu2 %v2055_v10  ;;  %2244 = vadd.xlane.f32.xlu1 %v2243_v17 }
 0x280   :  { %2158 = vmatmul.bf16.vlgmr.msra.gmra.mxu0 %v4314_v6  ;;  %2186 = vmatmul.bf16.vlgmr.msra.gmra.mxu2 %v4314_v6 }
 0x281   :  { %2172 = vmatmul.bf16.vlgmr.msra.gmra.mxu1 %v2149_v50  ;;  %2200 = vmatmul.bf16.vlgmr.msra.gmra.mxu3 %v2149_v50 }
 0x2db   :  { %v2242_v53 = vpop.xlane.xlu0 %2241  ;;  %v2054_v13 = vpop.xlane.xlu2 %2053 }
 0x2dc   :  { %v2267_v30 = vmul.f32 0.1118034, %v2242_v53  ;;  %v2210_v42 = vmul.f32 %v2567_v26, %v2054_v13  ;;  %v2211_v48 = vmul.f32 %v2568_v23, %v2054_v13 }
 0x2de   :  { %v2269_v41 = vadd.f32 -100.0, %v2267_v30 }
 0x2e0   :  { %2271 = vst [vmem:[#allocation12] sm:$0xff] %v2269_v41 }
 0x2e5   :  { %v2245_v18 = vpop.xlane.xlu1 %2244  ;;  %v2057_v14 = vpop.xlane.xlu2 %2056 }
 0x2e6   :  { %v2268_v0 = vmul.f32 0.1118034, %v2245_v18  ;;  %v2212_v7 = vmul.f32 %v2569_v57, %v2057_v14  ;;  %v2213_v16 = vmul.f32 %v2570_v61, %v2057_v14 }
 0x2e8   :  { %v2270_v38 = vadd.f32 -100.0, %v2268_v0 }
 0x2ea   :  { %2272 = vst [vmem:[#allocation12 + $0x8] sm:$0xff] %v2270_v38 }
 0x2eb   :  { %2285 = dma.vmem_to_hbm [thread:$0]  %s2278_s19, 256, %s2280_s22, [#allocation6], %s2730_s15, %s2730_s15, %s2731_s16  }
 0x2ed   :  { %v2101_v37 = vpop.f32.mrf.mxu0 }
 0x2ee   :  { %v2115_v5 = vpop.f32.mrf.mxu1 }
 0x2ef   :  { %v2116_v34 = vadd.f32 %v2115_v5, %v2101_v37 }
 0x2f1   :  { %v2214_v3 = vsub.f32 %v2210_v42, %v2116_v34 }
 0x2f3   :  { %v2129_v15 = vpop.f32.mrf.mxu2  ;;  %v2218_v2 = vmul.f32 0.2236068, %v2214_v3 }
 0x2f4   :  { %v2143_v27 = vpop.f32.mrf.mxu3 }
 0x2f5   :  { %v2103_v24 = vpop.f32.mrf.mxu0  ;;  %v2144_v62 = vadd.f32 %v2143_v27, %v2129_v15 }
 0x2f6   :  { %v2117_v33 = vpop.f32.mrf.mxu1 }
 0x2f7   :  { %v2118_v49 = vadd.f32 %v2117_v33, %v2103_v24  ;;  %v2215_v4 = vsub.f32 %v2211_v48, %v2144_v62 }
 0x2f9   :  { %v2216_v32 = vsub.f32 %v2212_v7, %v2118_v49  ;;  %v2219_v20 = vmul.f32 0.2236068, %v2215_v4 }
 0x2fb   :  { %v2131_v55 = vpop.f32.mrf.mxu2  ;;  %v2220_v28 = vmul.f32 0.2236068, %v2216_v32 }
 0x2fc   :  { %v2145_v39 = vpop.f32.mrf.mxu3 }
 0x2fd   :  { %v2159_v8 = vpop.f32.mrf.mxu0  ;;  %v2146_v35 = vadd.f32 %v2145_v39, %v2131_v55 }
 0x2fe   :  { %v2173_v59 = vpop.f32.mrf.mxu1 }
 0x2ff   :  { %v2174_v11 = vadd.f32 %v2173_v59, %v2159_v8  ;;  %v2217_v40 = vsub.f32 %v2213_v16, %v2146_v35 }
 0x301   :  { %v2222_v25 = vsub.f32 %v2218_v2, %v2174_v11  ;;  %v2221_v45 = vmul.f32 0.2236068, %v2217_v40 }
 0x303   :  { %v2187_v21 = vpop.f32.mrf.mxu2  ;;  %v2257_v47 = vmul.f32 0.025, %v2222_v25 }
 0x304   :  { %v2201_v54 = vpop.f32.mrf.mxu3 }
 0x305   :  { %v2202_v63 = vadd.f32 %v2201_v54, %v2187_v21  ;;  %v2161_v51 = vpop.f32.mrf.mxu0  ;;  %2261 = vst [vmem:[#allocation13] sm:$0xff] %v2257_v47 }
 0x306   :  { %v2175_v1 = vpop.f32.mrf.mxu1 }
 0x307   :  { %v2223_v29 = vsub.f32 %v2219_v20, %v2202_v63  ;;  %v2176_v36 = vadd.f32 %v2175_v1, %v2161_v51 }
 0x309   :  { %v2224_v52 = vsub.f32 %v2220_v28, %v2176_v36  ;;  %v2258_v19 = vmul.f32 0.025, %v2223_v29 }
 0x30b   :  { %v2189_v9 = vpop.f32.mrf.mxu2  ;;  %v2259_v31 = vmul.f32 0.025, %v2224_v52  ;;  %2262 = vst [vmem:[#allocation13 + $0x8] sm:$0xff] %v2258_v19 }
 0x30c   :  { %v2203_v56 = vpop.f32.mrf.mxu3 }
 0x30d   :  { %v2204_v46 = vadd.f32 %v2203_v56, %v2189_v9  ;;  %2263 = vst [vmem:[#allocation13 + $0x10] sm:$0xff] %v2259_v31 }
 0x30f   :  { %v2225_v43 = vsub.f32 %v2221_v45, %v2204_v46 }
 0x311   :  { %v2260_v58 = vmul.f32 0.025, %v2225_v43 }
 0x313   :  { %2264 = vst [vmem:[#allocation13 + $0x18] sm:$0xff] %v2260_v58 }
 0x314   :  { %2298 = dma.vmem_to_hbm [thread:$0]  %s2291_s23, 512, %s2293_s26, [#allocation14], %s2726_s29, %s2726_s29, %s2727_s30  }
 0x315   :  { %2721 = dma.done.wait [#allocation6], 256  }
 0x316   :  { %2722 = vsyncadd [#allocation6], 4294967040 }
 0x317   :  { %2723 = dma.done.wait [#allocation14], 512  }
 0x318   :  { %2724 = vsyncadd [#allocation14], 4294966784 }
 0x319   :  { %2307 = vsyncpa [#allocation5], 1 }
 0x31a   :  { %2308 = vsyncpa [#allocation8], 1 }
 0x31b   :  { %2309 = vsyncpa [#allocation11], 1 }
 0x31c   :  { %2310 = vsyncpa [#allocation6], 1 }
 0x31d   :  { %2311 = vsyncpa [#allocation14], 1 }

</bundles_post_ra>
